<compile_context>
chip_gen: v6e
topology: v6e:2x2x1
jax: 0.10.0
libtpu: 0.0.40
codegen_flags: <defaults>
</compile_context>

<pallas_src>
import functools
import math

import numpy as np
import jax
import jax.numpy as jnp
from jax import lax
from jax.experimental import pallas as pl
from jax.experimental.pallas import tpu as pltpu

NUM_GROUPS = 32          # nn.GroupNorm(32, channels)
GN_EPS = 1e-5            # PyTorch GroupNorm default eps


def _pick_block_q(T):
    """Largest query tile (multiple of 8) that divides T, capped at 512."""
    for cand in (512, 256, 128, 64, 32, 16, 8):
        if T >= cand and T % cand == 0:
            return cand
    return T


def _vmem_limit_bytes():
    """~75% of physical per-TensorCore VMEM (v5e/v6e: 96 MiB, v7x: 48 MiB), safe fallback 48 MiB."""
    try:
        cap = getattr(pltpu.get_tpu_info(), "vmem_capacity_bytes", None)
        if cap:
            return int(min(cap * 3 // 4, 96 * 1024 * 1024))
    except Exception:
        pass
    return 48 * 1024 * 1024


def attention_block_kernel(x_ref, gamma_ref, beta_ref, mask_cg_ref, mask_gc_ref,
                           wqkv_ref, wproj_ref, bproj_ref,
                           out_ref, qkv_ref, pv_ref,
                           *, num_groups, num_heads, block_q):
    """Grid = (batch, q_tile). qkv_ref: [T, 3C] bf16 scratch; pv_ref: [Tq, C] bf16 scratch."""
    qi = pl.program_id(1)
    T = x_ref.shape[1]
    C = x_ref.shape[2]
    d = C // num_heads

    # ---- q-tile 0: GroupNorm(32, C) (two-pass, f32) + one wide fused qkv matmul ----
    @pl.when(qi == 0)
    def _():
        x = x_ref[0]                                             # [T, C] f32
        n = float(T * (C // num_groups))

        col_sum = jnp.sum(x, axis=0, keepdims=True)              # [1, C]
        g_sum = jnp.dot(col_sum, mask_cg_ref[...],
                        preferred_element_type=jnp.float32)      # [1, G]
        mean_c = jnp.dot(g_sum / n, mask_gc_ref[...],
                         preferred_element_type=jnp.float32)     # [1, C]
        xc = x - mean_c                                          # centered (avoids E[x^2]-m^2 cancellation)
        col_ss = jnp.sum(xc * xc, axis=0, keepdims=True)         # [1, C]
        g_ss = jnp.dot(col_ss, mask_cg_ref[...],
                       preferred_element_type=jnp.float32)       # [1, G]
        var_c = jnp.dot(g_ss / n, mask_gc_ref[...],
                        preferred_element_type=jnp.float32)      # [1, C]
        scale_c = lax.rsqrt(var_c + GN_EPS) * gamma_ref[...]     # gamma folded into the scale
        xn = (xc * scale_c + beta_ref[...]).astype(jnp.bfloat16)  # [T, C] bf16 (stays in registers)

        # all heads' q|k|v in one MXU pass (N = 3C); attention scale already folded into wq/wk cols.
        qkv_ref[...] = jnp.dot(xn, wqkv_ref[...],
                               preferred_element_type=jnp.float32).astype(qkv_ref.dtype)

    # ---- per-q-tile attention over all heads ----
    q0 = pl.multiple_of(qi * block_q, block_q)
    for h in range(num_heads):                                   # static unroll (num_heads is small)
        q_h = qkv_ref[pl.ds(q0, block_q), h * d:(h + 1) * d]             # [Tq, d] bf16
        k_h = qkv_ref[:, C + h * d: C + (h + 1) * d]                     # [T, d]  bf16
        v_h = qkv_ref[:, 2 * C + h * d: 2 * C + (h + 1) * d]             # [T, d]  bf16

        # q @ k^T without materializing a transposed copy of k
        logits = lax.dot_general(q_h, k_h, (((1,), (1,)), ((), ())),
                                 preferred_element_type=jnp.float32)     # [Tq, T] f32
        logits = logits - jnp.max(logits, axis=-1, keepdims=True)
        p = jnp.exp(logits)
        p = p / jnp.sum(p, axis=-1, keepdims=True)                       # exact divide (correctness note)

        pv_h = jnp.dot(p.astype(jnp.bfloat16), v_h,
                       preferred_element_type=jnp.float32)               # [Tq, d] f32
        pv_ref[:, h * d:(h + 1) * d] = pv_h.astype(pv_ref.dtype)         # head's slab of [Tq, C]

    # ---- single full-depth projection (K = C) + bias + residual -> output tile ----
    proj = jnp.dot(pv_ref[...], wproj_ref[...],
                   preferred_element_type=jnp.float32)                   # [Tq, C] f32
    out_ref[0] = (proj + bproj_ref[...]
                  + x_ref[0, pl.ds(q0, block_q), :]).astype(out_ref.dtype)


@functools.partial(jax.jit, static_argnums=(6,))
def attention_block(x, gamma, beta, wqkv, wproj, bproj, num_heads):
    """x: [B, C, H, W]; gamma/beta/bproj: [C]; wqkv: [3C, C]; wproj: [C, C]."""
    B, C, H, W = x.shape
    T = H * W
    G = NUM_GROUPS
    assert C % G == 0 and C % num_heads == 0
    d = C // num_heads
    scale = 1.0 / math.sqrt(math.sqrt(d))   # 1/sqrt(sqrt(C // num_heads))
    block_q = _pick_block_q(T)
    nq = T // block_q

    # NCHW -> [B, T, C]
    x_t = x.reshape(B, C, T).transpose(0, 2, 1).astype(jnp.float32)

    # group-membership masks so GroupNorm stats reduce via (tiny) matmuls
    ch = jnp.arange(C)
    mask_cg = (ch[:, None] // (C // G) == jnp.arange(G)[None, :]).astype(jnp.float32)   # [C, G]
    mask_gc = mask_cg.T                                                                 # [G, C]

    # Fused head-major qkv weight [C, 3C]: columns are [q(all heads) | k(all heads) | v(all heads)],
    # within each part ordered by (head, channel); attention scale folded into q and k (exact, no bias).
    w3 = wqkv.astype(jnp.float32).reshape(num_heads, 3, d, C)          # out ch = h*3d + part*d + j
    wq_f = jnp.transpose(w3[:, 0] * scale, (2, 0, 1)).reshape(C, C)
    wk_f = jnp.transpose(w3[:, 1] * scale, (2, 0, 1)).reshape(C, C)
    wv_f = jnp.transpose(w3[:, 2], (2, 0, 1)).reshape(C, C)
    wqkv_fused = jnp.concatenate([wq_f, wk_f, wv_f], axis=1).astype(jnp.bfloat16)       # [C, 3C]
    wproj_k = wproj.T.astype(jnp.bfloat16)                                              # [C(in), C(out)]

    gamma2 = gamma.reshape(1, C).astype(jnp.float32)
    beta2 = beta.reshape(1, C).astype(jnp.float32)
    bproj2 = bproj.reshape(1, C).astype(jnp.float32)

    kernel = functools.partial(attention_block_kernel, num_groups=G,
                               num_heads=num_heads, block_q=block_q)

    out = pl.pallas_call(
        kernel,
        out_shape=jax.ShapeDtypeStruct((B, T, C), jnp.float32),
        grid_spec=pltpu.PrefetchScalarGridSpec(
            num_scalar_prefetch=0,
            grid=(B, nq),
            in_specs=[
                pl.BlockSpec((1, T, C), lambda b, q: (b, 0, 0)),       # x (per-batch, resident across q tiles)
                pl.BlockSpec((1, C), lambda b, q: (0, 0)),             # GroupNorm gamma
                pl.BlockSpec((1, C), lambda b, q: (0, 0)),             # GroupNorm beta
                pl.BlockSpec((C, G), lambda b, q: (0, 0)),             # mask channel->group
                pl.BlockSpec((G, C), lambda b, q: (0, 0)),             # mask group->channel
                pl.BlockSpec((C, 3 * C), lambda b, q: (0, 0)),         # fused qkv weight (scale folded)
                pl.BlockSpec((C, C), lambda b, q: (0, 0)),             # proj weight (transposed)
                pl.BlockSpec((1, C), lambda b, q: (0, 0)),             # proj bias
            ],
            out_specs=pl.BlockSpec((1, block_q, C), lambda b, q: (b, q, 0)),
            scratch_shapes=[
                pltpu.VMEM((T, 3 * C), jnp.bfloat16),     # fused qkv, resident across q tiles
                pltpu.VMEM((block_q, C), jnp.bfloat16),   # per-tile pv slab (all heads)
            ],
        ),
        compiler_params=pltpu.CompilerParams(
            dimension_semantics=("parallel", "arbitrary"),
            vmem_limit_bytes=_vmem_limit_bytes()),
    )(x_t, gamma2, beta2, mask_cg, mask_gc, wqkv_fused, wproj_k, bproj2)

    # [B, T, C] -> NCHW
    return out.transpose(0, 2, 1).reshape(B, C, H, W)


def reference(x, gamma, beta, wqkv, wproj, bproj, num_heads):
    """Pure-JAX replica of the PyTorch forward (correctness check, all f32)."""
    B, C, H, W = x.shape
    G = NUM_GROUPS
    xg = x.reshape(B, G, C // G, H, W)
    mean = xg.mean(axis=(2, 3, 4), keepdims=True)
    var = xg.var(axis=(2, 3, 4), keepdims=True)
    xn = ((xg - mean) / jnp.sqrt(var + GN_EPS)).reshape(B, C, H, W)
    xn = xn * gamma[None, :, None, None] + beta[None, :, None, None]
    qkv = jnp.einsum('oc,bchw->bohw', wqkv, xn)                      # [B, 3C, H, W]
    T = H * W
    d = C // num_heads
    qkv = qkv.reshape(B * num_heads, 3 * d, T)
    q, k, v = qkv[:, :d], qkv[:, d:2 * d], qkv[:, 2 * d:]
    scale = 1.0 / math.sqrt(math.sqrt(d))
    attn = jnp.einsum('bct,bcs->bts', q * scale, k * scale)
    attn = jax.nn.softmax(attn, axis=-1)
    h = jnp.einsum('bts,bcs->bct', attn, v)
    h = h.reshape(B, C, H, W)
    h = jnp.einsum('oc,bchw->bohw', wproj, h) + bproj[None, :, None, None]
    return h + x


if __name__ == "__main__":
    B, C, H, W = 2, 64, 8, 8     # channels must be divisible by 32 (GroupNorm groups)
    num_heads = 2

    key = jax.random.PRNGKey(0)
    ks = jax.random.split(key, 6)
    x = jax.random.normal(ks[0], (B, C, H, W), jnp.float32)
    # deterministic synthetic parameters (shapes follow the module __init__)
    gamma = 1.0 + 0.1 * jax.random.normal(ks[1], (C,), jnp.float32)     # GroupNorm weight
    beta = 0.1 * jax.random.normal(ks[2], (C,), jnp.float32)            # GroupNorm bias
    wqkv = 0.05 * jax.random.normal(ks[3], (3 * C, C), jnp.float32)     # Conv2d(C,3C,1) weight
    wproj = 0.05 * jax.random.normal(ks[4], (C, C), jnp.float32)        # Conv2d(C,C,1) weight
    bproj = 0.05 * jax.random.normal(ks[5], (C,), jnp.float32)          # Conv2d(C,C,1) bias

    out = attention_block(x, gamma, beta, wqkv, wproj, bproj, num_heads)
    out = jax.block_until_ready(out)

    ref = reference(x, gamma, beta, wqkv, wproj, bproj, num_heads)
    np.testing.assert_allclose(np.asarray(out), np.asarray(ref), rtol=2e-2, atol=2e-2)
    print("KERNEL_OK")
</pallas_src>

<mosaic_0001>
module attributes {stable_mosaic.version = 11 : i64} {
  func.func @attention_block_kernel(%arg0: i32, %arg1: i32, %arg2: memref<1x64x64xf32, #tpu.memory_space<vmem>>, %arg3: memref<1x64xf32, #tpu.memory_space<vmem>>, %arg4: memref<1x64xf32, #tpu.memory_space<vmem>>, %arg5: memref<64x32xf32, #tpu.memory_space<vmem>>, %arg6: memref<32x64xf32, #tpu.memory_space<vmem>>, %arg7: memref<64x192xbf16, #tpu.memory_space<vmem>>, %arg8: memref<64x64xbf16, #tpu.memory_space<vmem>>, %arg9: memref<1x64xf32, #tpu.memory_space<vmem>>, %arg10: memref<1x64x64xf32, #tpu.memory_space<vmem>>, %arg11: memref<64x192xbf16, #tpu.memory_space<vmem>>, %arg12: memref<64x64xbf16, #tpu.memory_space<vmem>>) attributes {dimension_semantics = [#tpu.dimension_semantics<parallel>, #tpu.dimension_semantics<arbitrary>], iteration_bounds = array<i64: 2, 1>, scalar_prefetch = 0 : i64, scratch_operands = 2 : i64, tpu.core_type = #tpu.core_type<tc>, window_params = [{transform_indices = @transform_0, window_bounds = array<i64: 1, 64, 64>}, {pipeline_mode = #tpu.pipeline_mode<synchronous>, transform_indices = @transform_1, window_bounds = array<i64: 1, 64>}, {pipeline_mode = #tpu.pipeline_mode<synchronous>, transform_indices = @transform_2, window_bounds = array<i64: 1, 64>}, {pipeline_mode = #tpu.pipeline_mode<synchronous>, transform_indices = @transform_3, window_bounds = array<i64: 64, 32>}, {pipeline_mode = #tpu.pipeline_mode<synchronous>, transform_indices = @transform_4, window_bounds = array<i64: 32, 64>}, {pipeline_mode = #tpu.pipeline_mode<synchronous>, transform_indices = @transform_5, window_bounds = array<i64: 64, 192>}, {pipeline_mode = #tpu.pipeline_mode<synchronous>, transform_indices = @transform_6, window_bounds = array<i64: 64, 64>}, {pipeline_mode = #tpu.pipeline_mode<synchronous>, transform_indices = @transform_7, window_bounds = array<i64: 1, 64>}, {transform_indices = @transform_8, window_bounds = array<i64: 1, 64, 64>}]} {
    %c0_i32 = arith.constant 0 : i32
    %0 = arith.cmpi eq, %arg1, %c0_i32 : i32
    %1 = arith.extui %0 : i1 to i32
    %c0_i32_0 = arith.constant 0 : i32
    %2 = arith.cmpi ne, %1, %c0_i32_0 : i32
    scf.if %2 {
      %c0_28 = arith.constant 0 : index
      %c0_29 = arith.constant 0 : index
      %c0_30 = arith.constant 0 : index
      %54 = vector.load %arg2[%c0_28, %c0_29, %c0_30] : memref<1x64x64xf32, #tpu.memory_space<vmem>>, vector<1x64x64xf32>
      %55 = vector.shape_cast %54 : vector<1x64x64xf32> to vector<64x64xf32>
      %cst_31 = arith.constant dense<0.000000e+00> : vector<64xf32>
      %56 = vector.multi_reduction <add>, %55, %cst_31 [0] : vector<64x64xf32> to vector<64xf32>
      %57 = vector.shape_cast %56 : vector<64xf32> to vector<1x64xf32>
      %c0_32 = arith.constant 0 : index
      %c0_33 = arith.constant 0 : index
      %58 = vector.load %arg5[%c0_32, %c0_33] : memref<64x32xf32, #tpu.memory_space<vmem>>, vector<64x32xf32>
      %cst_34 = arith.constant dense<0.000000e+00> : vector<1x32xf32>
      %59 = tpu.matmul %57, %58, %cst_34 {dimension_numbers = #tpu.dot_dimension_numbers<[1], [0], [0], [1], [0, 0, 1, 1], [], []>} : vector<1x64xf32>, vector<64x32xf32>, vector<1x32xf32> -> vector<1x32xf32>
      %cst_35 = arith.constant 1.280000e+02 : f32
      %60 = vector.broadcast %cst_35 : f32 to vector<1x32xf32>
      %61 = arith.divf %59, %60 : vector<1x32xf32>
      %c0_36 = arith.constant 0 : index
      %c0_37 = arith.constant 0 : index
      %62 = vector.load %arg6[%c0_36, %c0_37] : memref<32x64xf32, #tpu.memory_space<vmem>>, vector<32x64xf32>
      %cst_38 = arith.constant dense<0.000000e+00> : vector<1x64xf32>
      %63 = tpu.matmul %61, %62, %cst_38 {dimension_numbers = #tpu.dot_dimension_numbers<[1], [0], [0], [1], [0, 0, 1, 1], [], []>} : vector<1x32xf32>, vector<32x64xf32>, vector<1x64xf32> -> vector<1x64xf32>
      %64 = vector.broadcast %63 : vector<1x64xf32> to vector<64x64xf32>
      %65 = arith.subf %55, %64 : vector<64x64xf32>
      %66 = arith.mulf %65, %65 : vector<64x64xf32>
      %cst_39 = arith.constant dense<0.000000e+00> : vector<64xf32>
      %67 = vector.multi_reduction <add>, %66, %cst_39 [0] : vector<64x64xf32> to vector<64xf32>
      %68 = vector.shape_cast %67 : vector<64xf32> to vector<1x64xf32>
      %c0_40 = arith.constant 0 : index
      %c0_41 = arith.constant 0 : index
      %69 = vector.load %arg5[%c0_40, %c0_41] : memref<64x32xf32, #tpu.memory_space<vmem>>, vector<64x32xf32>
      %cst_42 = arith.constant dense<0.000000e+00> : vector<1x32xf32>
      %70 = tpu.matmul %68, %69, %cst_42 {dimension_numbers = #tpu.dot_dimension_numbers<[1], [0], [0], [1], [0, 0, 1, 1], [], []>} : vector<1x64xf32>, vector<64x32xf32>, vector<1x32xf32> -> vector<1x32xf32>
      %cst_43 = arith.constant 1.280000e+02 : f32
      %71 = vector.broadcast %cst_43 : f32 to vector<1x32xf32>
      %72 = arith.divf %70, %71 : vector<1x32xf32>
      %c0_44 = arith.constant 0 : index
      %c0_45 = arith.constant 0 : index
      %73 = vector.load %arg6[%c0_44, %c0_45] : memref<32x64xf32, #tpu.memory_space<vmem>>, vector<32x64xf32>
      %cst_46 = arith.constant dense<0.000000e+00> : vector<1x64xf32>
      %74 = tpu.matmul %72, %73, %cst_46 {dimension_numbers = #tpu.dot_dimension_numbers<[1], [0], [0], [1], [0, 0, 1, 1], [], []>} : vector<1x32xf32>, vector<32x64xf32>, vector<1x64xf32> -> vector<1x64xf32>
      %cst_47 = arith.constant 9.99999974E-6 : f32
      %75 = vector.broadcast %cst_47 : f32 to vector<1x64xf32>
      %76 = arith.addf %74, %75 : vector<1x64xf32>
      %77 = math.rsqrt %76 : vector<1x64xf32>
      %c0_48 = arith.constant 0 : index
      %c0_49 = arith.constant 0 : index
      %78 = vector.load %arg3[%c0_48, %c0_49] : memref<1x64xf32, #tpu.memory_space<vmem>>, vector<1x64xf32>
      %79 = arith.mulf %77, %78 : vector<1x64xf32>
      %80 = vector.broadcast %79 : vector<1x64xf32> to vector<64x64xf32>
      %81 = arith.mulf %65, %80 : vector<64x64xf32>
      %c0_50 = arith.constant 0 : index
      %c0_51 = arith.constant 0 : index
      %82 = vector.load %arg4[%c0_50, %c0_51] : memref<1x64xf32, #tpu.memory_space<vmem>>, vector<1x64xf32>
      %83 = vector.broadcast %82 : vector<1x64xf32> to vector<64x64xf32>
      %84 = arith.addf %81, %83 : vector<64x64xf32>
      %85 = arith.truncf %84 : vector<64x64xf32> to vector<64x64xbf16>
      %c0_52 = arith.constant 0 : index
      %c0_53 = arith.constant 0 : index
      %86 = vector.load %arg7[%c0_52, %c0_53] : memref<64x192xbf16, #tpu.memory_space<vmem>>, vector<64x192xbf16>
      %cst_54 = arith.constant dense<0.000000e+00> : vector<64x192xf32>
      %87 = tpu.matmul %85, %86, %cst_54 {dimension_numbers = #tpu.dot_dimension_numbers<[1], [0], [0], [1], [0, 0, 1, 1], [], []>} : vector<64x64xbf16>, vector<64x192xbf16>, vector<64x192xf32> -> vector<64x192xf32>
      %88 = arith.truncf %87 : vector<64x192xf32> to vector<64x192xbf16>
      %c0_55 = arith.constant 0 : index
      %c0_56 = arith.constant 0 : index
      %89 = vector.load %arg11[%c0_55, %c0_56] : memref<64x192xbf16, #tpu.memory_space<vmem>>, vector<64x192xbf16>
      tpu.vector_store %arg11[%c0_55, %c0_56], %88 {strides = array<i32>} : memref<64x192xbf16, #tpu.memory_space<vmem>>, vector<64x192xbf16>,
    } else {
    }
    %c64_i32 = arith.constant 64 : i32
    %3 = arith.muli %arg1, %c64_i32 : i32
    %4 = tpu.assume_multiple %3, 64 : i32
    %5 = arith.index_cast %4 : i32 to index
    %c0 = arith.constant 0 : index
    %6 = vector.load %arg11[%5, %c0] : memref<64x192xbf16, #tpu.memory_space<vmem>>, vector<64x32xbf16>
    %c0_1 = arith.constant 0 : index
    %c64 = arith.constant 64 : index
    %7 = vector.load %arg11[%c0_1, %c64] : memref<64x192xbf16, #tpu.memory_space<vmem>>, vector<64x32xbf16>
    %c0_2 = arith.constant 0 : index
    %c128 = arith.constant 128 : index
    %8 = vector.load %arg11[%c0_2, %c128] : memref<64x192xbf16, #tpu.memory_space<vmem>>, vector<64x32xbf16>
    %cst = arith.constant dense<0.000000e+00> : vector<64x64xf32>
    %9 = tpu.matmul %6, %7, %cst {dimension_numbers = #tpu.dot_dimension_numbers<[1], [1], [0], [0], [0, 0, 1, 0], [], []>} : vector<64x32xbf16>, vector<64x32xbf16>, vector<64x64xf32> -> vector<64x64xf32>
    %cst_3 = arith.constant dense<0xFF800000> : vector<64xf32>
    %10 = vector.multi_reduction <maximumf>, %9, %cst_3 [1] : vector<64x64xf32> to vector<64xf32>
    %11 = vector.shape_cast %10 : vector<64xf32> to vector<64x1xf32>
    %12 = vector.broadcast %11 : vector<64x1xf32> to vector<64x64xf32>
    %13 = arith.subf %9, %12 : vector<64x64xf32>
    %14 = math.exp %13 : vector<64x64xf32>
    %cst_4 = arith.constant dense<0.000000e+00> : vector<64xf32>
    %15 = vector.multi_reduction <add>, %14, %cst_4 [1] : vector<64x64xf32> to vector<64xf32>
    %16 = vector.shape_cast %15 : vector<64xf32> to vector<64x1xf32>
    %17 = vector.broadcast %16 : vector<64x1xf32> to vector<64x64xf32>
    %18 = arith.divf %14, %17 : vector<64x64xf32>
    %19 = arith.truncf %18 : vector<64x64xf32> to vector<64x64xbf16>
    %cst_5 = arith.constant dense<0.000000e+00> : vector<64x32xf32>
    %20 = tpu.matmul %19, %8, %cst_5 {dimension_numbers = #tpu.dot_dimension_numbers<[1], [0], [0], [1], [0, 0, 1, 1], [], []>} : vector<64x64xbf16>, vector<64x32xbf16>, vector<64x32xf32> -> vector<64x32xf32>
    %21 = arith.truncf %20 : vector<64x32xf32> to vector<64x32xbf16>
    %c0_6 = arith.constant 0 : index
    %c0_7 = arith.constant 0 : index
    %22 = vector.load %arg12[%c0_6, %c0_7] : memref<64x64xbf16, #tpu.memory_space<vmem>>, vector<64x32xbf16>
    tpu.vector_store %arg12[%c0_6, %c0_7], %21 {strides = array<i32>} : memref<64x64xbf16, #tpu.memory_space<vmem>>, vector<64x32xbf16>,
    %23 = arith.index_cast %4 : i32 to index
    %c32 = arith.constant 32 : index
    %24 = vector.load %arg11[%23, %c32] : memref<64x192xbf16, #tpu.memory_space<vmem>>, vector<64x32xbf16>
    %c0_8 = arith.constant 0 : index
    %c96 = arith.constant 96 : index
    %25 = vector.load %arg11[%c0_8, %c96] : memref<64x192xbf16, #tpu.memory_space<vmem>>, vector<64x32xbf16>
    %c0_9 = arith.constant 0 : index
    %c160 = arith.constant 160 : index
    %26 = vector.load %arg11[%c0_9, %c160] : memref<64x192xbf16, #tpu.memory_space<vmem>>, vector<64x32xbf16>
    %cst_10 = arith.constant dense<0.000000e+00> : vector<64x64xf32>
    %27 = tpu.matmul %24, %25, %cst_10 {dimension_numbers = #tpu.dot_dimension_numbers<[1], [1], [0], [0], [0, 0, 1, 0], [], []>} : vector<64x32xbf16>, vector<64x32xbf16>, vector<64x64xf32> -> vector<64x64xf32>
    %cst_11 = arith.constant dense<0xFF800000> : vector<64xf32>
    %28 = vector.multi_reduction <maximumf>, %27, %cst_11 [1] : vector<64x64xf32> to vector<64xf32>
    %29 = vector.shape_cast %28 : vector<64xf32> to vector<64x1xf32>
    %30 = vector.broadcast %29 : vector<64x1xf32> to vector<64x64xf32>
    %31 = arith.subf %27, %30 : vector<64x64xf32>
    %32 = math.exp %31 : vector<64x64xf32>
    %cst_12 = arith.constant dense<0.000000e+00> : vector<64xf32>
    %33 = vector.multi_reduction <add>, %32, %cst_12 [1] : vector<64x64xf32> to vector<64xf32>
    %34 = vector.shape_cast %33 : vector<64xf32> to vector<64x1xf32>
    %35 = vector.broadcast %34 : vector<64x1xf32> to vector<64x64xf32>
    %36 = arith.divf %32, %35 : vector<64x64xf32>
    %37 = arith.truncf %36 : vector<64x64xf32> to vector<64x64xbf16>
    %cst_13 = arith.constant dense<0.000000e+00> : vector<64x32xf32>
    %38 = tpu.matmul %37, %26, %cst_13 {dimension_numbers = #tpu.dot_dimension_numbers<[1], [0], [0], [1], [0, 0, 1, 1], [], []>} : vector<64x64xbf16>, vector<64x32xbf16>, vector<64x32xf32> -> vector<64x32xf32>
    %39 = arith.truncf %38 : vector<64x32xf32> to vector<64x32xbf16>
    %c0_14 = arith.constant 0 : index
    %c32_15 = arith.constant 32 : index
    %40 = vector.load %arg12[%c0_14, %c32_15] : memref<64x64xbf16, #tpu.memory_space<vmem>>, vector<64x32xbf16>
    tpu.vector_store %arg12[%c0_14, %c32_15], %39 {strides = array<i32>} : memref<64x64xbf16, #tpu.memory_space<vmem>>, vector<64x32xbf16>,
    %c0_16 = arith.constant 0 : index
    %c0_17 = arith.constant 0 : index
    %41 = vector.load %arg12[%c0_16, %c0_17] : memref<64x64xbf16, #tpu.memory_space<vmem>>, vector<64x64xbf16>
    %c0_18 = arith.constant 0 : index
    %c0_19 = arith.constant 0 : index
    %42 = vector.load %arg8[%c0_18, %c0_19] : memref<64x64xbf16, #tpu.memory_space<vmem>>, vector<64x64xbf16>
    %cst_20 = arith.constant dense<0.000000e+00> : vector<64x64xf32>
    %43 = tpu.matmul %41, %42, %cst_20 {dimension_numbers = #tpu.dot_dimension_numbers<[1], [0], [0], [1], [0, 0, 1, 1], [], []>} : vector<64x64xbf16>, vector<64x64xbf16>, vector<64x64xf32> -> vector<64x64xf32>
    %c0_21 = arith.constant 0 : index
    %c0_22 = arith.constant 0 : index
    %44 = vector.load %arg9[%c0_21, %c0_22] : memref<1x64xf32, #tpu.memory_space<vmem>>, vector<1x64xf32>
    %45 = vector.broadcast %44 : vector<1x64xf32> to vector<64x64xf32>
    %46 = arith.addf %43, %45 : vector<64x64xf32>
    %c0_23 = arith.constant 0 : index
    %47 = arith.index_cast %4 : i32 to index
    %c0_24 = arith.constant 0 : index
    %48 = vector.load %arg2[%c0_23, %47, %c0_24] : memref<1x64x64xf32, #tpu.memory_space<vmem>>, vector<1x64x64xf32>
    %49 = vector.shape_cast %48 : vector<1x64x64xf32> to vector<64x64xf32>
    %50 = arith.addf %46, %49 : vector<64x64xf32>
    %c0_25 = arith.constant 0 : index
    %c0_26 = arith.constant 0 : index
    %c0_27 = arith.constant 0 : index
    %51 = vector.load %arg10[%c0_25, %c0_26, %c0_27] : memref<1x64x64xf32, #tpu.memory_space<vmem>>, vector<1x64x64xf32>
    %52 = vector.shape_cast %51 : vector<1x64x64xf32> to vector<64x64xf32>
    %53 = vector.shape_cast %50 : vector<64x64xf32> to vector<1x64x64xf32>
    tpu.vector_store %arg10[%c0_25, %c0_26, %c0_27], %53 {strides = array<i32>} : memref<1x64x64xf32, #tpu.memory_space<vmem>>, vector<1x64x64xf32>,
    return
  }
  func.func @transform_0(%arg0: i32, %arg1: i32) -> (i32, i32, i32) {
    %c0_i32 = arith.constant 0 : i32
    %c0_i32_0 = arith.constant 0 : i32
    %c0_i32_1 = arith.constant 0 : i32
    return %arg0, %c0_i32, %c0_i32_0 : i32, i32, i32
  }
  func.func @transform_1(%arg0: i32, %arg1: i32) -> (i32, i32) {
    %c0_i32 = arith.constant 0 : i32
    %c0_i32_0 = arith.constant 0 : i32
    %c0_i32_1 = arith.constant 0 : i32
    return %c0_i32, %c0_i32_0 : i32, i32
  }
  func.func @transform_2(%arg0: i32, %arg1: i32) -> (i32, i32) {
    %c0_i32 = arith.constant 0 : i32
    %c0_i32_0 = arith.constant 0 : i32
    %c0_i32_1 = arith.constant 0 : i32
    return %c0_i32, %c0_i32_0 : i32, i32
  }
  func.func @transform_3(%arg0: i32, %arg1: i32) -> (i32, i32) {
    %c0_i32 = arith.constant 0 : i32
    %c0_i32_0 = arith.constant 0 : i32
    %c0_i32_1 = arith.constant 0 : i32
    return %c0_i32, %c0_i32_0 : i32, i32
  }
  func.func @transform_4(%arg0: i32, %arg1: i32) -> (i32, i32) {
    %c0_i32 = arith.constant 0 : i32
    %c0_i32_0 = arith.constant 0 : i32
    %c0_i32_1 = arith.constant 0 : i32
    return %c0_i32, %c0_i32_0 : i32, i32
  }
  func.func @transform_5(%arg0: i32, %arg1: i32) -> (i32, i32) {
    %c0_i32 = arith.constant 0 : i32
    %c0_i32_0 = arith.constant 0 : i32
    %c0_i32_1 = arith.constant 0 : i32
    return %c0_i32, %c0_i32_0 : i32, i32
  }
  func.func @transform_6(%arg0: i32, %arg1: i32) -> (i32, i32) {
    %c0_i32 = arith.constant 0 : i32
    %c0_i32_0 = arith.constant 0 : i32
    %c0_i32_1 = arith.constant 0 : i32
    return %c0_i32, %c0_i32_0 : i32, i32
  }
  func.func @transform_7(%arg0: i32, %arg1: i32) -> (i32, i32) {
    %c0_i32 = arith.constant 0 : i32
    %c0_i32_0 = arith.constant 0 : i32
    %c0_i32_1 = arith.constant 0 : i32
    return %c0_i32, %c0_i32_0 : i32, i32
  }
  func.func @transform_8(%arg0: i32, %arg1: i32) -> (i32, i32, i32) {
    %c0_i32 = arith.constant 0 : i32
    %c0_i32_0 = arith.constant 0 : i32
    return %arg0, %arg1, %c0_i32 : i32, i32, i32
  }
}

</mosaic_0001>

<bundles_post_ra>
// kernel: attention_block.1
= control target key start
LH: loop header
LB: loop body
LE: loop exit
PB: predicated region body
PF: predicated region fallthrough
CT: control target
= control target key end

     0   :  { %13 = vsyncpa [#allocation5], 0  ;;  %s3310_s0 = inlined_call_operand.vmem [shape: f32[2,64,64], index: 0, kind: input, shape index: {}]   ;;  %s3311_s1 = inlined_call_operand.vmem [shape: f32[1,64], index: 1, kind: input, shape index: {}]   ;;  %s3312_s2 = inlined_call_operand.vmem [shape: f32[1,64], index: 2, kind: input, shape index: {}]   ;;  %s3313_s3 = inlined_call_operand.vmem [shape: f32[64,32], index: 3, kind: input, shape index: {}]   ;;  %s3314_s4 = inlined_call_operand.vmem [shape: f32[32,64], index: 4, kind: input, shape index: {}]   ;;  %s3315_s5 = inlined_call_operand.vmem [shape: bf16[64,192], index: 5, kind: input, shape index: {}]   ;;  %s3316_s6 = inlined_call_operand.vmem [shape: bf16[64,64], index: 6, kind: input, shape index: {}]   ;;  %s3317_s7 = inlined_call_operand.vmem [shape: f32[1,64], index: 7, kind: input, shape index: {}]   ;;  %s3318_s8 = inlined_call_operand.hbm [shape: f32[2,64,64], index: 8, kind: output, shape index: {}]  }
   0x1   :  { %15 = vsyncpa [#allocation5 + $0x1], 0  ;;  %s2675_s27 = smov 0   ;;  %s2677_s28 = smov 0  }
   0x2   :  { %s2679_s29 = smov 0   ;;  %s2681_s30 = smov 0  }
   0x3   :  { %s2683_s9 = smov 0   ;;  %s2685_s10 = smov 0  }
   0x4 LB: > { %s2021_s11 = sadd.s32 4294967295, %s2619_s10   ;;  %s2022_s12 = sadd.s32 4294967294, %s2619_s10   ;;  %s2619_s10 = sphi %s2685_s10, %s21_s10   ;;  %s2615_s9 = sphi %s2683_s9, %s3327_s9   ;;  %s2611_s30 = sphi %s2681_s30, %s3326_s30   ;;  %s2607_s29 = sphi %s2679_s29, %s3325_s29   ;;  %s2603_s28 = sphi %s2677_s28, %s3324_s28   ;;  %s2599_s27 = sphi %s2675_s27, %s3323_s27  }
   0x5   : > { %s33_s13 = sadd.s32 1, %s2615_s9  ;;  %s215_s14 = sadd.s32 1, %s2607_s29 }
   0x6   : > { %p35_p0 = scmp.ge.s32.totalorder %s33_s13, 2  ;;  %p225_p1 = scmp.ne.s32.totalorder %s2607_s29, %s2603_s28 }
   0x7   : > { %p226_p2 = scmp.eq.s32.totalorder %s2021_s11, 1  ;;  %p231_p3 = scmp.ne.s32.totalorder %s2603_s28, %s2599_s27 }
   0x8   : > { %s3329_s13 = smov (%p35_p0, %s33_s13), 0  ;;  %p232_p5 = scmp.eq.s32.totalorder %s2022_s12, 1 }
   0x9   : > { %p2715_p4 = por %p226_p2, %p225_p1  ;;  %s210_s16 = ssub.s32 %s2615_s9, %s3329_s13 }
   0xa   : > { %p2025_p6 = scmp.ge.s32.totalorder %s2619_s10, 1  ;;  %p213_p7 = scmp.eq.s32.totalorder %s210_s16, 0 }
   0xb   : > { %p2722_p8 = por %p232_p5, %p231_p3  ;;  %p279_p9 = scmp.lt.s32.totalorder %s2619_s10, 3 }
   0xc   : > { %s2728_s18 = scalar_select %p213_p7, %s2607_s29, %s215_s14  }
   0xd   : > { %p280_p10 = pnand %p2025_p6, %p279_p9 }
   0xe   : > { %p313_p11 = scmp.lt.s32.totalorder (!%p280_p10), %s2611_s30, 1  ;;  %s2624_s22 = smov (!%p280_p10), 64  }
   0xf   : > { %283 = sbr.rel (%p280_p10) target bundleno = 2380 (0x94c), region = 52  ;;  %s2625_s24 = smov (!%p280_p10), 32  }
  0x10   : > { %s2153_s12 = sshll.u32 (!%p280_p10), %s2611_s30, 10  ;;  %s2627_s21 = smov (!%p280_p10), [#allocation4]  }
  0x14   : > { %v2733_v0 = vld [vmem:[%s3313_s3 + $0x38] sm:$0xff]  ;;  %v2621_v1 = vmov 0.0   ;;  %v2740_v2 = vld [vmem:[%s3313_s3 + $0x30] sm:$0xff]  ;;  %vm2622_vm0 = vmmov 0   ;;  %v2748_v3 = vld [vmem:[%s3313_s3 + $0x28] sm:$0xff]  ;;  %s314_s25 = scalar_select %p313_p11, %s2611_s30, 1  ;;  %v515_v45 = vlaneseq }
  0x15   : > { %2222 = vmatprep.subr.mxu0 %v2621_v1  ;;  %2238 = vmatprep.mubr.msk.f32.mxu0 %vm2622_vm0, %v2621_v1  ;;  %v2755_v4 = vld [vmem:[%s3314_s4 + $0x18] sm:$0xff]  ;;  %v2761_v5 = vld [vmem:[%s3313_s3 + $0x20] sm:$0xff]  ;;  %v2767_v6 = vld [vmem:[%s3314_s4 + $0x10] sm:$0xff]  ;;  %vm332_vm1 = vcmask 523264   ;;  %vm441_vm2 = vcmask 261120   ;;  %vm918_vm3 = vcmask 1043456  }
  0x16   : > { %2223 = vmatpush3.msra.mxu0 %v2733_v0  ;;  %2241 = vmatprep.subr.mxu1 %v2621_v1  ;;  %s2128_s20 = sshll.u32 %s314_s25, 6  ;;  %v357_v10 = vld [vmem:[%s3313_s3 + $0x18] sm:$0xff]  ;;  %v356_v16 = vld [vmem:[%s3313_s3 + $0x10] sm:$0xff]  ;;  %v355_v19 = vld [vmem:[%s3313_s3 + $0x8] sm:$0xff]  ;;  %v2870_v46 = vshrl.u32 %v515_v45, 7  ;;  %vm919_vm4 = vcmask 523268  }
  0x17   : > { %2224 = vmatprep.subr.mxu0 %v2621_v1  ;;  %2242 = vmatpush3.msra.mxu1 %v2755_v4  ;;  %s2775_s23 = scalar_lea.vmem %s3310_s0, %s2128_s20  ;;  %v354_v25 = vld [vmem:[%s3313_s3] sm:$0xff]  ;;  %v2844_v40 = vld [vmem:[%s3314_s4 + $0x8] sm:$0xff]  ;;  %vm2978_vm5 = vmor %vm919_vm4, %vm918_vm3  ;;  %s2626_s25 = smov 96   ;;  %vm1323_vm6 = vcmask 257024   ;;  %vm1750_vm7 = vcmask 519424  }
  0x18   : > { %2225 = vmatpush3.msra.mxu0 %v2740_v2  ;;  %2243 = vmatprep.subr.mxu1 %v2621_v1  ;;  %v2780_v7 = vld [vmem:[%s2775_s23] sm:$0xff]  ;;  %v2783_v8 = vld [vmem:[%s2775_s23 + $0x8] sm:$0xff]  ;;  %v2786_v9 = vld [vmem:[%s2775_s23 + $0x10] sm:$0xff]  ;;  %v517_v47 = vsub.s32 0, %v2870_v46  ;;  %s3255_s20 = scalar_lea.hbm %s3318_s8, %s2153_s12 }
  0x19   : > { %2226 = vmatprep.subr.mxu0 %v2621_v1  ;;  %2244 = vmatpush3.msra.mxu1 %v2767_v6  ;;  %v2794_v11 = vld [vmem:[%s2775_s23 + $0x18] sm:$0xff]  ;;  %v2797_v12 = vld [vmem:[%s2775_s23 + $0x20] sm:$0xff]  ;;  %v333_v13 = vsel %vm332_vm1, %v2780_v7, 0.0  ;;  %v334_v14 = vsel %vm332_vm1, %v2783_v8, 0.0  ;;  %v336_v15 = vsel %vm332_vm1, %v2786_v9, 0.0  ;;  %v2812_v17 = vld [vmem:[%s2775_s23 + $0x28] sm:$0xff] }
  0x1a   : > { %2227 = vmatpush3.msra.mxu0 %v2748_v3  ;;  %2245 = vmatprep.subr.mxu1 %v2621_v1  ;;  %v335_v18 = vadd.f32 %v334_v14, %v333_v13  ;;  %v338_v20 = vsel %vm332_vm1, %v2794_v11, 0.0  ;;  %v340_v21 = vsel %vm332_vm1, %v2797_v12, 0.0  ;;  %v2824_v23 = vld [vmem:[%s2775_s23 + $0x30] sm:$0xff]  ;;  %v342_v26 = vsel %vm332_vm1, %v2812_v17, 0.0  ;;  %v2833_v27 = vld [vmem:[%s2775_s23 + $0x38] sm:$0xff]  ;;  %v2851_v41 = vld [vmem:[%s3314_s4] sm:$0xff] }
  0x1b   : > { %2228 = vmatprep.subr.mxu0 %v2621_v1  ;;  %2249 = vmatprep.mubr.msk.f32.mxu1 %vm2622_vm0, %v2621_v1  ;;  %v344_v29 = vsel %vm332_vm1, %v2824_v23, 0.0  ;;  %v346_v31 = vsel %vm332_vm1, %v2833_v27, 0.0 }
  0x1c   : > { %2229 = vmatpush3.msra.mxu0 %v2761_v5  ;;  %v337_v22 = vadd.f32 %v336_v15, %v335_v18  ;;  %2246 = vmatpush3.msra.mxu1 %v2844_v40 }
  0x1d   : > { %2230 = vmatprep.subr.mxu0 %v2621_v1  ;;  %2247 = vmatprep.subr.mxu1 %v2621_v1 }
  0x1e   : > { %2231 = vmatpush3.msra.mxu0 %v357_v10  ;;  %v339_v24 = vadd.f32 %v338_v20, %v337_v22  ;;  %2248 = vmatpush3.msra.mxu1 %v2851_v41 }
  0x1f   : > { %2232 = vmatprep.subr.mxu0 %v2621_v1  ;;  %2252 = vmatprep.subr.mxu1 %v2621_v1 }
  0x20   : > { %2233 = vmatpush3.msra.mxu0 %v356_v16  ;;  %v341_v28 = vadd.f32 %v340_v21, %v339_v24 }
  0x21   : > { %2234 = vmatprep.subr.mxu0 %v2621_v1 }
  0x22   : > { %2235 = vmatpush3.msra.mxu0 %v355_v19  ;;  %v343_v30 = vadd.f32 %v342_v26, %v341_v28 }
  0x23   : > { %2236 = vmatprep.subr.mxu0 %v2621_v1 }
  0x24   : > { %2237 = vmatpush3.msra.mxu0 %v354_v25  ;;  %v345_v32 = vadd.f32 %v344_v29, %v343_v30  ;;  %v2436_v30 = vld [vmem:[%s3315_s5 + $0x20] ss:$8 sps:$4 sm:$0xff]  }
  0x26   : > { %v347_v33 = vadd.f32 %v346_v31, %v345_v32  ;;  %v2439_v31 = vld [vmem:[%s3315_s5 + $0x10] ss:$8 sps:$4 sm:$0xff]   ;;  %v2441_v32 = vld [vmem:[%s3315_s5 + $0x14] ss:$8 sps:$4 sm:$0xff]  }
  0x28   : > { %v348_v34 = vrot.slane %v347_v33, 4 }
  0x2a   : > { %v349_v35 = vadd.f32 %v348_v34, %v347_v33  ;;  %v2444_v33 = vld [vmem:[%s3315_s5 + $0x4] ss:$8 sps:$4 sm:$0xff]   ;;  %v2623_v34 = vmov 0  }
  0x2c   : > { %v350_v36 = vrot.slane %v349_v35, 2 }
  0x2e   : > { %v351_v37 = vadd.f32 %v350_v36, %v349_v35  ;;  %v2442_v35 = vld [vmem:[%s3315_s5] ss:$8 sps:$4 sm:$0xff]  }
  0x30   : > { %v352_v38 = vrot.slane %v351_v37, 1 }
  0x32   : > { %v353_v39 = vadd.f32 %v352_v38, %v351_v37 }
  0x34   : > { %2239 = vmatmul.mubr.msk.f32.vlgmr.msra.gmra.mxu0 %vm332_vm1, %v353_v39  ;;  %v704_v39 = vld [vmem:[%s3311_s1] sm:$0x1] }
  0x35   : > { %829 = vmatprep.mubr.bf16.mxu0 %v2623_v34 }
  0xf4   : > { %v431_v42 = vpop.f32.mrf.mxu0 }
  0xf5   : > { %v436_v43 = vmul.f32 0.0078125, %v431_v42 }
  0xf6   : > { %v2240_v44 = vpop.f32.mrf.mxu0 }
  0xf7   : > { %2250 = vmatmul.mubr.msk.f32.vlgmr.msra.gmra.mxu1 %vm441_vm2, %v436_v43  ;;  %v2033_v43 = vld [vmem:[%s3312_s2] ss:$0 sm:$0xff] }
  0xf8   : > { %2253 = vmatpush3.msra.mxu1 %v2733_v0  ;;  %2268 = vmatprep.mubr.msk.f32.mxu1 %vm2622_vm0, %v2621_v1 }
  0xf9   : > { %2254 = vmatprep.subr.mxu1 %v2621_v1 }
  0xfa   : > { %2255 = vmatpush3.msra.mxu1 %v2740_v2 }
  0xfb   : > { %2256 = vmatprep.subr.mxu1 %v2621_v1 }
  0xfc   : > { %2257 = vmatpush3.msra.mxu1 %v2748_v3 }
  0xfd   : > { %2258 = vmatprep.subr.mxu1 %v2621_v1 }
  0xfe   : > { %2259 = vmatpush3.msra.mxu1 %v2761_v5 }
  0xff   : > { %2260 = vmatprep.subr.mxu1 %v2621_v1 }
 0x100   : > { %2261 = vmatpush3.msra.mxu1 %v357_v10 }
 0x101   : > { %2262 = vmatprep.subr.mxu1 %v2621_v1 }
 0x102   : > { %2263 = vmatpush3.msra.mxu1 %v356_v16 }
 0x103   : > { %2264 = vmatprep.subr.mxu1 %v2621_v1 }
 0x104   : > { %2265 = vmatpush3.msra.mxu1 %v355_v19 }
 0x105   : > { %2266 = vmatprep.subr.mxu1 %v2621_v1 }
 0x106   : > { %2267 = vmatpush3.msra.mxu1 %v354_v25 }
 0x107   : > { %2271 = vmatprep.subr.mxu1 %v2621_v1 }
 0x1b7   : > { %v511_v48 = vpop.f32.mrf.mxu1 }
 0x1b8   : > { %v518_v49 = vrot.slane %v511_v48, %v517_v47 }
 0x1b9   : > { %v2251_v50 = vpop.f32.mrf.mxu1 }
 0x1ba   : > { %v2876_v51 = vsub.f32 %v2780_v7, %v518_v49  ;;  %v2879_v52 = vsub.f32 %v2783_v8, %v518_v49  ;;  %v2882_v53 = vsub.f32 %v2786_v9, %v518_v49  ;;  %v2885_v54 = vsub.f32 %v2794_v11, %v518_v49 }
 0x1bb   : > { %v2888_v55 = vsub.f32 %v2797_v12, %v518_v49  ;;  %v2897_v59 = vsub.f32 %v2812_v17, %v518_v49  ;;  %v2904_v0 = vsub.f32 %v2824_v23, %v518_v49  ;;  %v2910_v7 = vsub.f32 %v2833_v27, %v518_v49 }
 0x1bc   : > { %v527_v56 = vmul.f32 %v2876_v51, %v2876_v51  ;;  %v528_v57 = vmul.f32 %v2879_v52, %v2879_v52  ;;  %v529_v58 = vmul.f32 %v2882_v53, %v2882_v53  ;;  %v530_v60 = vmul.f32 %v2885_v54, %v2885_v54 }
 0x1bd   : > { %v531_v2 = vmul.f32 %v2888_v55, %v2888_v55  ;;  %v532_v8 = vmul.f32 %v2897_v59, %v2897_v59  ;;  %v533_v11 = vmul.f32 %v2904_v0, %v2904_v0  ;;  %v534_v14 = vmul.f32 %v2910_v7, %v2910_v7 }
 0x1be   : > { %v535_v61 = vsel %vm332_vm1, %v527_v56, 0.0  ;;  %v536_v62 = vsel %vm332_vm1, %v528_v57, 0.0  ;;  %v538_v3 = vsel %vm332_vm1, %v529_v58, 0.0  ;;  %v540_v9 = vsel %vm332_vm1, %v530_v60, 0.0 }
 0x1bf   : > { %v537_v63 = vadd.f32 %v536_v62, %v535_v61  ;;  %v542_v12 = vsel %vm332_vm1, %v531_v2, 0.0  ;;  %v544_v15 = vsel %vm332_vm1, %v532_v8, 0.0  ;;  %v546_v17 = vsel %vm332_vm1, %v533_v11, 0.0 }
 0x1c0   : > { %v548_v19 = vsel %vm332_vm1, %v534_v14, 0.0 }
 0x1c1   : > { %v539_v5 = vadd.f32 %v538_v3, %v537_v63 }
 0x1c3   : > { %v541_v10 = vadd.f32 %v540_v9, %v539_v5 }
 0x1c5   : > { %v543_v13 = vadd.f32 %v542_v12, %v541_v10 }
 0x1c7   : > { %v545_v16 = vadd.f32 %v544_v15, %v543_v13 }
 0x1c9   : > { %v547_v18 = vadd.f32 %v546_v17, %v545_v16 }
 0x1cb   : > { %v549_v20 = vadd.f32 %v548_v19, %v547_v18 }
 0x1cd   : > { %v550_v21 = vrot.slane %v549_v20, 4 }
 0x1cf   : > { %v551_v22 = vadd.f32 %v550_v21, %v549_v20 }
 0x1d1   : > { %v552_v23 = vrot.slane %v551_v22, 2 }
 0x1d3   : > { %v553_v24 = vadd.f32 %v552_v23, %v551_v22 }
 0x1d5   : > { %v554_v25 = vrot.slane %v553_v24, 1 }
 0x1d7   : > { %v555_v26 = vadd.f32 %v554_v25, %v553_v24 }
 0x1d9   : > { %2269 = vmatmul.mubr.msk.f32.vlgmr.msra.gmra.mxu1 %vm332_vm1, %v555_v26 }
 0x1da   : > { %2272 = vmatpush3.msra.mxu1 %v2755_v4  ;;  %2279 = vmatprep.mubr.msk.f32.mxu1 %vm2622_vm0, %v2621_v1  ;;  %v2435_v4 = vld [vmem:[%s3315_s5 + $0x34] ss:$8 sps:$4 sm:$0xff]  }
 0x1db   : > { %2273 = vmatprep.subr.mxu1 %v2621_v1  ;;  %805 = vmatprep.subr.bf16.mxu0 %v2435_v4 }
 0x1dc   : > { %2274 = vmatpush3.msra.mxu1 %v2767_v6  ;;  %v2433_v6 = vld [vmem:[%s3315_s5 + $0x30] ss:$8 sps:$4 sm:$0xff]  }
 0x1dd   : > { %2275 = vmatprep.subr.mxu1 %v2621_v1  ;;  %806 = vmatpush1.bf16.msra.mxu0 %v2433_v6 }
 0x1de   : > { %2276 = vmatpush3.msra.mxu1 %v2844_v40 }
 0x1df   : > { %2277 = vmatprep.subr.mxu1 %v2621_v1  ;;  %v2438_v1 = vld [vmem:[%s3315_s5 + $0x24] ss:$8 sps:$4 sm:$0xff]  }
 0x1e0   : > { %2278 = vmatpush3.msra.mxu1 %v2851_v41  ;;  %807 = vmatprep.subr.bf16.mxu0 %v2438_v1 }
 0x1e1   : > { %808 = vmatpush1.bf16.msra.mxu0 %v2436_v30 }
 0x1e2   : > { %809 = vmatprep.subr.bf16.mxu0 %v2441_v32 }
 0x1e5   : > { %810 = vmatpush1.bf16.msra.mxu0 %v2439_v31 }
 0x1e6   : > { %811 = vmatprep.subr.bf16.mxu0 %v2444_v33 }
 0x1e9   : > { %812 = vmatpush1.bf16.msra.mxu0 %v2442_v35 }
 0x299   : > { %v625_v27 = vpop.f32.mrf.mxu1 }
 0x29a   : > { %v629_v28 = vmul.f32 0.0078125, %v625_v27 }
 0x29b   : > { %v2270_v29 = vpop.f32.mrf.mxu1 }
 0x29c   : > { %2280 = vmatmul.mubr.msk.f32.vlgmr.msra.gmra.mxu1 %vm441_vm2, %v629_v28 }
 0x35c   : > { %v699_v36 = vpop.f32.mrf.mxu1 }
 0x35d   : > { %v700_v37 = vadd.f32 1e-05, %v699_v36 }
 0x35e   : > { %v2281_v38 = vpop.f32.mrf.mxu1 }
 0x35f   : > { %2477 = vrsqrt.f32 %v700_v37 }
 0x36c   : > { %v2478_v40 = vpop.eup %2477 }
 0x36d   : > { %v705_v41 = vmul.f32 %v2478_v40, %v704_v39 }
 0x36f   : > { %v709_v42 = vrot.slane %v705_v41, %v517_v47 }
 0x371   : > { %v710_v44 = vmul.f32 %v709_v42, %v2876_v51  ;;  %v711_v45 = vmul.f32 %v709_v42, %v2879_v52  ;;  %v712_v56 = vmul.f32 %v709_v42, %v2882_v53  ;;  %v713_v57 = vmul.f32 %v709_v42, %v2885_v54 }
 0x372   : > { %v714_v60 = vmul.f32 %v709_v42, %v2888_v55  ;;  %v715_v61 = vmul.f32 %v709_v42, %v2897_v59  ;;  %v716_v53 = vmul.f32 %v709_v42, %v2904_v0  ;;  %v717_v54 = vmul.f32 %v709_v42, %v2910_v7 }
 0x373   : > { %v725_v48 = vadd.f32 %v2033_v43, %v710_v44  ;;  %v726_v49 = vadd.f32 %v2033_v43, %v711_v45  ;;  %v727_v46 = vadd.f32 %v2033_v43, %v712_v56  ;;  %v728_v47 = vadd.f32 %v2033_v43, %v713_v57 }
 0x374   : > { %v729_v51 = vadd.f32 %v2033_v43, %v714_v60  ;;  %v730_v52 = vadd.f32 %v2033_v43, %v715_v61  ;;  %v731_v63 = vadd.f32 %v2033_v43, %v716_v53  ;;  %v732_v2 = vadd.f32 %v2033_v43, %v717_v54 }
 0x375   : > { %v733_v50 = vpack.c.bf16 %v726_v49, %v725_v48  ;;  %v734_v58 = vpack.c.bf16 %v728_v47, %v727_v46 }
 0x376   : > { %v735_v62 = vpack.c.bf16 %v730_v52, %v729_v51  ;;  %v736_v3 = vpack.c.bf16 %v732_v2, %v731_v63 }
 0x377   : > { %2042 = vmatmul.mubr.msk.bf16.vlgmr.msra.gmra.mxu0 %vm332_vm1, %v733_v50 }
 0x378   : > { %839 = vmatprep.mubr.bf16.mxu0 %v2623_v34 }
 0x37f   : > { %2043 = vmatmul.mubr.msk.bf16.gmra.mxu0 %vm332_vm1, %v734_v58 }
 0x380   : > { %849 = vmatprep.mubr.bf16.mxu0 %v2623_v34 }
 0x387   : > { %2044 = vmatmul.mubr.msk.bf16.gmra.mxu0 %vm332_vm1, %v735_v62 }
 0x388   : > { %859 = vmatprep.mubr.bf16.mxu0 %v2623_v34 }
 0x38f   : > { %2045 = vmatmul.mubr.msk.bf16.gmra.mxu0 %vm332_vm1, %v736_v3 }
 0x437   : > { %v831_v55 = vpop.f32.mrf.mxu0 }
 0x439   : > { %v833_v59 = vpop.f32.mrf.mxu0 }
 0x43a   : > { %v2129_v8 = vpack.c.bf16 %v833_v59, %v831_v55 }
 0x43b   : > { %v835_v0 = vpop.f32.mrf.mxu0 }
 0x43c   : > { %921 = vst.msk [vmem:[#allocation2] sm:$0xff] %vm2978_vm5, %v2129_v8 }
 0x43d   : > { %v837_v7 = vpop.f32.mrf.mxu0 }
 0x43e   : > { %v2130_v9 = vpack.c.bf16 %v837_v7, %v835_v0 }
 0x43f   : > { %v841_v10 = vpop.f32.mrf.mxu0 }
 0x440   : > { %922 = vst.msk [vmem:[#allocation2 + $0x8] sm:$0xff] %vm2978_vm5, %v2130_v9 }
 0x441   : > { %v843_v11 = vpop.f32.mrf.mxu0 }
 0x442   : > { %v2131_v12 = vpack.c.bf16 %v843_v11, %v841_v10 }
 0x443   : > { %v845_v13 = vpop.f32.mrf.mxu0 }
 0x444   : > { %923 = vst.msk [vmem:[#allocation2 + $0x10] sm:$0xff] %vm2978_vm5, %v2131_v12 }
 0x445   : > { %v847_v14 = vpop.f32.mrf.mxu0 }
 0x446   : > { %v2132_v15 = vpack.c.bf16 %v847_v14, %v845_v13 }
 0x447   : > { %v851_v16 = vpop.f32.mrf.mxu0  ;;  %v2445_v17 = vld [vmem:[#allocation2] ss:$8 sps:$4 sm:$0xff]   ;;  %v2458_v38 = vld [vmem:[#allocation2 + $0x4] ss:$8 sps:$4 sm:$0xff]  }
 0x448   : > { %924 = vst.msk [vmem:[#allocation2 + $0x18] sm:$0xff] %vm2978_vm5, %v2132_v15  ;;  %2290 = vmatprep.mubr.msk.bf16.mxu1 %vm441_vm2, %v2445_v17  ;;  %v2447_v27 = vld [vmem:[#allocation2] ss:$8 sps:$4 sm:$0xff]  }
 0x449   : > { %v853_v18 = vpop.f32.mrf.mxu0  ;;  %v2449_v1 = vld [vmem:[#allocation2] ss:$8 sps:$4 sm:$0xff]  }
 0x44a   : > { %v2133_v19 = vpack.c.bf16 %v853_v18, %v851_v16  ;;  %v2460_v40 = vld [vmem:[#allocation2] ss:$8 sps:$4 sm:$0xff]  }
 0x44b   : > { %v855_v20 = vpop.f32.mrf.mxu0 }
 0x44c   : > { %925 = vst.msk [vmem:[#allocation2 + $0x20] sm:$0xff] %vm2978_vm5, %v2133_v19 }
 0x44d   : > { %v857_v21 = vpop.f32.mrf.mxu0 }
 0x44e   : > { %v2134_v22 = vpack.c.bf16 %v857_v21, %v855_v20 }
 0x44f   : > { %v861_v23 = vpop.f32.mrf.mxu0  ;;  %v2446_v24 = vld [vmem:[#allocation2 + $0x10] ss:$8 sps:$4 sm:$0xff]   ;;  %v2456_v36 = vld [vmem:[#allocation2 + $0x14] ss:$8 sps:$4 sm:$0xff]  }
 0x450   : > { %926 = vst.msk [vmem:[#allocation2 + $0x28] sm:$0xff] %vm2978_vm5, %v2134_v22  ;;  %1001 = vrot.lane.b32.xlu1 %v2446_v24, %s2624_s22  ;;  %v2450_v30 = vld [vmem:[#allocation2 + $0x10] ss:$8 sps:$4 sm:$0xff]  }
 0x451   : > { %v863_v25 = vpop.f32.mrf.mxu0  ;;  %v2459_v39 = vld [vmem:[#allocation2 + $0x10] ss:$8 sps:$4 sm:$0xff]  }
 0x452   : > { %v2135_v26 = vpack.c.bf16 %v863_v25, %v861_v23  ;;  %v2462_v46 = vld [vmem:[#allocation2 + $0x10] ss:$8 sps:$4 sm:$0xff]  }
 0x453   : > { %v865_v28 = vpop.f32.mrf.mxu0 }
 0x454   : > { %927 = vst.msk [vmem:[#allocation2 + $0x30] sm:$0xff] %vm2978_vm5, %v2135_v26  ;;  %999 = vrot.lane.b32.xlu1 %v2447_v27, %s2624_s22 }
 0x455   : > { %v867_v29 = vpop.f32.mrf.mxu0 }
 0x456   : > { %v2136_v4 = vpack.c.bf16 %v867_v29, %v865_v28 }
 0x457   : > { %v2448_v6 = vld [vmem:[#allocation2 + $0x20] ss:$8 sps:$4 sm:$0xff]   ;;  %v2453_v33 = vld [vmem:[#allocation2 + $0x24] ss:$8 sps:$4 sm:$0xff]  }
 0x458   : > { %928 = vst.msk [vmem:[#allocation2 + $0x38] sm:$0xff] %vm2978_vm5, %v2136_v4  ;;  %1408 = vrot.lane.b32.xlu1 %v2448_v6, %s2625_s24  ;;  %v2455_v35 = vld [vmem:[#allocation2 + $0x20] ss:$8 sps:$4 sm:$0xff]  }
 0x459   : > { %v2461_v41 = vld [vmem:[#allocation2 + $0x20] ss:$8 sps:$4 sm:$0xff]  }
 0x45a   : > { %v2463_v47 = vld [vmem:[#allocation2 + $0x20] ss:$8 sps:$4 sm:$0xff]  }
 0x45c   : > { %1404 = vrot.lane.b32.xlu1 %v2449_v1, %s2625_s24 }
 0x45f   : > { %v2451_v31 = vld [vmem:[#allocation2 + $0x34] ss:$8 sps:$4 sm:$0xff]   ;;  %v2452_v32 = vld [vmem:[#allocation2 + $0x30] ss:$8 sps:$4 sm:$0xff]  }
 0x460   : > { %1378 = vrot.lane.b32.xlu1 %v2450_v30, %s2626_s25  ;;  %2298 = vmatprep.subr.bf16.mxu0 %v2451_v31  ;;  %v2454_v34 = vld [vmem:[#allocation2 + $0x30] ss:$8 sps:$4 sm:$0xff]  }
 0x461   : > { %1005 = vrot.lane.b32.xlu0 %v2452_v32, %s2624_s22  ;;  %2299 = vmatpush3.bf16.msra.mxu0 %v2451_v31  ;;  %v2457_v37 = vld [vmem:[#allocation2 + $0x30] ss:$8 sps:$4 sm:$0xff]  }
 0x462   : > { %2300 = vmatprep.subr.bf16.mxu0 %v2453_v33  ;;  %v2464_v51 = vld [vmem:[#allocation2 + $0x30] ss:$8 sps:$4 sm:$0xff]  }
 0x464   : > { %1382 = vrot.lane.b32.xlu1 %v2454_v34, %s2626_s25 }
 0x465   : > { %1003 = vrot.lane.b32.xlu0 %v2455_v35, %s2624_s22  ;;  %2301 = vmatpush3.bf16.msra.mxu0 %v2453_v33  ;;  %v2465_v33 = vld [vmem:[#allocation2 + $0x34] ss:$8 sps:$4 sm:$0xff]   ;;  %s310_s22 = sand.u32 1, %s2603_s28  }
 0x466   : > { %2302 = vmatprep.subr.bf16.mxu0 %v2456_v36  ;;  %s2026_s26 = sshll.u32 %s310_s22, 6  ;;  %s3265_s30 = scalar_lea.sflag [#allocation5], %s310_s22 }
 0x467   : > { %s3231_s11 = scalar_lea.vmem [#allocation4], %s2026_s26 }
 0x468   : > { %s1944_s14 = sshll.u32 %s3231_s11, 4  ;;  %s3257_s14 = int_to_ptr.vmem [resolvable:$true] %s1944_s14 }
 0x469   : > { %1410 = vrot.lane.b32.xlu0 %v2457_v37, %s2625_s24  ;;  %2303 = vmatpush3.bf16.msra.mxu0 %v2456_v36 }
 0x46a   : > { %2304 = vmatprep.subr.bf16.mxu0 %v2458_v38 }
 0x46d   : > { %1406 = vrot.lane.b32.xlu0 %v2459_v39, %s2625_s24  ;;  %2305 = vmatpush3.bf16.msra.mxu0 %v2458_v38 }
 0x471   : > { %1376 = vrot.lane.b32.xlu0 %v2460_v40, %s2626_s25 }
 0x475   : > { %1380 = vrot.lane.b32.xlu0 %v2461_v41, %s2626_s25 }
 0x4c2   : > { %v1002_v48 = vpop.permute.xlu1 %1001 }
 0x4c3   : > { %v1024_v49 = vsel %vm441_vm2, %v1002_v48, 0 }
 0x4c6   : > { %v1000_v50 = vpop.permute.xlu1 %999 }
 0x4c7   : > { %v1021_v56 = vsel %vm441_vm2, %v1000_v50, 0 }
 0x4ca   : > { %v1409_v60 = vpop.permute.xlu1 %1408 }
 0x4cb   : > { %v1431_v52 = vsel %vm441_vm2, %v1409_v60, 0 }
 0x4ce   : > { %v1405_v54 = vpop.permute.xlu1 %1404 }
 0x4cf   : > { %v1425_v63 = vsel %vm441_vm2, %v1405_v54, 0 }
 0x4d2   : > { %v1379_v2 = vpop.permute.xlu1 %1378 }
 0x4d3   : > { %v1006_v42 = vpop.permute.xlu0 %1005 }
 0x4d4   : > { %v1030_v43 = vsel %vm441_vm2, %v1006_v42, 0  ;;  %2362 = vmatprep.subr.msk.bf16.mxu1 %vm441_vm2, %v1006_v42 }
 0x4d5   : > { %2283 = vmatpush3.bf16.xpose.msra.mxu1 %v1030_v43 }
 0x4d6   : > { %v1383_v55 = vpop.permute.xlu1 %1382 }
 0x4d7   : > { %v1004_v44 = vpop.permute.xlu0 %1003 }
 0x4d8   : > { %2363 = vmatprep.subr.msk.bf16.mxu1 %vm441_vm2, %v1004_v44  ;;  %v1027_v45 = vsel %vm441_vm2, %v1004_v44, 0 }
 0x4db   : > { %v1411_v57 = vpop.permute.xlu0 %1410 }
 0x4dc   : > { %v1434_v58 = vsel %vm441_vm2, %v1411_v57, 0 }
 0x4dd   : > { %2285 = vmatpush3.bf16.xpose.msra.mxu1 %v1027_v45 }
 0x4de   : > { %2364 = vmatprep.subr.msk.bf16.mxu1 %vm441_vm2, %v1002_v48 }
 0x4df   : > { %v1407_v61 = vpop.permute.xlu0 %1406 }
 0x4e0   : > { %v1428_v53 = vsel %vm441_vm2, %v1407_v61, 0 }
 0x4e3   : > { %v1377_v62 = vpop.permute.xlu0 %1376 }
 0x4e5   : > { %2287 = vmatpush3.bf16.xpose.msra.mxu1 %v1024_v49 }
 0x4e6   : > { %2365 = vmatprep.subr.msk.bf16.mxu1 %vm441_vm2, %v1000_v50 }
 0x4e7   : > { %v1381_v3 = vpop.permute.xlu0 %1380 }
 0x4ed   : > { %2289 = vmatpush3.bf16.xpose.msra.mxu1 %v1021_v56 }
 0x4ee   : > { %2366 = vmatprep.subr.msk.bf16.mxu1 %vm441_vm2, %v1411_v57 }
 0x4f4   : > { %2291 = vmatmul.mubr.msk.bf16.vlgmr.msra.gmra.mxu1 %vm441_vm2, %v2462_v46 }
 0x4f5   : > { %2294 = vmatprep.mubr.msk.bf16.mxu1 %vm441_vm2, %v2463_v47  ;;  %2315 = vmatpush3.bf16.xpose.msra.mxu1 %v1434_v58 }
 0x4f6   : > { %2367 = vmatprep.subr.msk.bf16.mxu1 %vm441_vm2, %v1409_v60 }
 0x4fc   : > { %2295 = vmatmul.mubr.msk.bf16.gmra.mxu1 %vm441_vm2, %v2464_v51 }
 0x4fd   : > { %2317 = vmatpush3.bf16.xpose.msra.mxu1 %v1431_v52  ;;  %2322 = vmatprep.mubr.msk.bf16.mxu1 %vm441_vm2, %v1377_v62 }
 0x4fe   : > { %2368 = vmatprep.subr.msk.bf16.mxu1 %vm441_vm2, %v1407_v61 }
 0x505   : > { %2319 = vmatpush3.bf16.xpose.msra.mxu1 %v1428_v53 }
 0x506   : > { %2369 = vmatprep.subr.msk.bf16.mxu1 %vm441_vm2, %v1405_v54 }
 0x50d   : > { %2321 = vmatpush3.bf16.xpose.msra.mxu1 %v1425_v63 }
 0x514   : > { %2323 = vmatmul.mubr.msk.bf16.vlgmr.msra.gmra.mxu1 %vm441_vm2, %v1379_v2 }
 0x515   : > { %2326 = vmatprep.mubr.msk.bf16.mxu1 %vm441_vm2, %v1381_v3 }
 0x51c   : > { %2327 = vmatmul.mubr.msk.bf16.gmra.mxu1 %vm441_vm2, %v1383_v55 }
 0x5b4   : > { %v2292_v59 = vpop.f32.mrf.mxu1 }
 0x5b5   : > { %v1104_v5 = vsel %vm332_vm1, %v2292_v59, -inf }
 0x5b6   : > { %1105 = vmax.xlane.f32.xlu0 %v1104_v5  ;;  %v1066_v8 = vpop.f32.mrf.mxu1 }
 0x5b7   : > { %v1098_v7 = vsel %vm332_vm1, %v1066_v8, -inf }
 0x5b8   : > { %v2293_v0 = vpop.f32.mrf.mxu1 }
 0x5b9   : > { %v1107_v12 = vsel %vm332_vm1, %v2293_v0, -inf }
 0x5ba   : > { %1099 = vmax.xlane.f32.xlu0 %v1098_v7  ;;  %v1069_v9 = vpop.f32.mrf.mxu1 }
 0x5bb   : > { %v1101_v10 = vsel %vm332_vm1, %v1069_v9, -inf }
 0x5bc   : > { %1102 = vmax.xlane.f32.xlu1 %v1101_v10  ;;  %v2296_v11 = vpop.f32.mrf.mxu1 }
 0x5bd   : > { %v1116_v14 = vsel %vm332_vm1, %v2296_v11, -inf }
 0x5be   : > { %1108 = vmax.xlane.f32.xlu0 %v1107_v12  ;;  %v1082_v13 = vpop.f32.mrf.mxu1 }
 0x5bf   : > { %v1110_v17 = vsel %vm332_vm1, %v1082_v13, -inf }
 0x5c0   : > { %1117 = vmax.xlane.f32.xlu1 %v1116_v14  ;;  %v3035_v15 = vpop.f32.mrf.mxu1 }
 0x5c1   : > { %v1119_v19 = vsel %vm332_vm1, %v3035_v15, -inf }
 0x5c2   : > { %v3037_v16 = vpop.f32.mrf.mxu1 }
 0x5c3   : > { %v1113_v18 = vsel %vm332_vm1, %v3037_v16, -inf }
 0x5c4   : > { %1111 = vmax.xlane.f32.xlu1 %v1110_v17  ;;  %1114 = vmax.xlane.f32.xlu0 %v1113_v18 }
 0x5c8   : > { %1120 = vmax.xlane.f32.xlu0 %v1119_v19 }
 0x5d4   : > { %v3044_v20 = vpop.f32.mrf.mxu1 }
 0x5d5   : > { %v1507_v21 = vsel %vm332_vm1, %v3044_v20, -inf }
 0x5d6   : > { %1508 = vmax.xlane.f32.xlu1 %v1507_v21  ;;  %v3048_v22 = vpop.f32.mrf.mxu1 }
 0x5d7   : > { %v1501_v24 = vsel %vm332_vm1, %v3048_v22, -inf }
 0x5d8   : > { %v3050_v23 = vpop.f32.mrf.mxu1 }
 0x5d9   : > { %v1510_v4 = vsel %vm332_vm1, %v3050_v23, -inf }
 0x5da   : > { %1502 = vmax.xlane.f32.xlu1 %v1501_v24  ;;  %v3054_v25 = vpop.f32.mrf.mxu1 }
 0x5db   : > { %v1504_v26 = vsel %vm332_vm1, %v3054_v25, -inf }
 0x5dc   : > { %v3058_v27 = vpop.f32.mrf.mxu1  ;;  %1505 = vmax.xlane.f32.xlu0 %v1504_v26 }
 0x5dd   : > { %v1519_v28 = vsel %vm332_vm1, %v3058_v27, -inf }
 0x5de   : > { %1520 = vmax.xlane.f32.xlu1 %v1519_v28  ;;  %v3062_v29 = vpop.f32.mrf.mxu1 }
 0x5df   : > { %v1513_v1 = vsel %vm332_vm1, %v3062_v29, -inf }
 0x5e0   : > { %v3066_v6 = vpop.f32.mrf.mxu1  ;;  %1511 = vmax.xlane.f32.xlu0 %v1510_v4 }
 0x5e1   : > { %v1522_v32 = vsel %vm332_vm1, %v3066_v6, -inf }
 0x5e2   : > { %1514 = vmax.xlane.f32.xlu1 %v1513_v1  ;;  %v3070_v30 = vpop.f32.mrf.mxu1 }
 0x5e3   : > { %v1516_v31 = vsel %vm332_vm1, %v3070_v30, -inf }
 0x5e4   : > { %1517 = vmax.xlane.f32.xlu0 %v1516_v31 }
 0x5e8   : > { %1523 = vmax.xlane.f32.xlu0 %v1522_v32 }
 0x5f3   : > { %1619 = vrot.lane.b32.xlu1 %v2465_v33, %s2626_s25 }
 0x63f   : > { %v1106_v34 = vpop.xlane.xlu0 %1105 }
 0x640   : > { %v1124_v35 = vsub.f32 %v2292_v59, %v1106_v34 }
 0x642   : > { %v1134_v36 = vmul.f32 1.442695, %v1124_v35 }
 0x643   : > { %v1100_v37 = vpop.xlane.xlu0 %1099 }
 0x644   : > { %2479 = vpow2.f32 %v1134_v36  ;;  %v1122_v38 = vsub.f32 %v1066_v8, %v1100_v37 }
 0x645   : > { %v1103_v39 = vpop.xlane.xlu1 %1102 }
 0x646   : > { %v1130_v40 = vmul.f32 1.442695, %v1122_v38  ;;  %v1123_v41 = vsub.f32 %v1069_v9, %v1103_v39 }
 0x647   : > { %v1109_v42 = vpop.xlane.xlu0 %1108 }
 0x648   : > { %2481 = vpow2.f32 %v1130_v40  ;;  %v1125_v43 = vsub.f32 %v2293_v0, %v1109_v42  ;;  %v1132_v44 = vmul.f32 1.442695, %v1123_v41 }
 0x649   : > { %v1118_v45 = vpop.xlane.xlu1 %1117 }
 0x64a   : > { %v1136_v48 = vmul.f32 1.442695, %v1125_v43  ;;  %v1128_v49 = vsub.f32 %v2296_v11, %v1118_v45 }
 0x64c   : > { %2483 = vpow2.f32 %v1136_v48  ;;  %v1142_v50 = vmul.f32 1.442695, %v1128_v49 }
 0x64d   : > { %2485 = vpow2.f32 %v1132_v44  ;;  %v1112_v56 = vpop.xlane.xlu1 %1111  ;;  %v1115_v57 = vpop.xlane.xlu0 %1114 }
 0x64e   : > { %2487 = vpow2.f32 %v1142_v50  ;;  %v1126_v46 = vsub.f32 %v1082_v13, %v1112_v56  ;;  %v1127_v58 = vsub.f32 %v3037_v16, %v1115_v57 }
 0x650   : > { %v1138_v47 = vmul.f32 1.442695, %v1126_v46  ;;  %v1140_v62 = vmul.f32 1.442695, %v1127_v58  ;;  %v2466_v46 = vld [vmem:[#allocation2 + $0x14] ss:$8 sps:$4 sm:$0xff]  }
 0x651   : > { %v3078_v60 = vpop.eup %2479  ;;  %v1121_v61 = vpop.xlane.xlu0 %1120  ;;  %v2468_v58 = vld [vmem:[#allocation2 + $0x24] ss:$8 sps:$4 sm:$0xff]  }
 0x652   : > { %2489 = vpow2.f32 %v1138_v47  ;;  %v1129_v51 = vsub.f32 %v3035_v15, %v1121_v61  ;;  %v1152_v52 = vsel %vm332_vm1, %v3078_v60, 0.0  ;;  %v2467_v47 = vld [vmem:[#allocation2 + $0x4] ss:$8 sps:$4 sm:$0xff]  }
 0x653   : > { %1153 = vadd.xlane.f32.xlu1 %v1152_v52 }
 0x654   : > { %v1144_v53 = vmul.f32 1.442695, %v1129_v51 }
 0x655   : > { %v3083_v54 = vpop.eup %2481 }
 0x656   : > { %2491 = vpow2.f32 %v1144_v53  ;;  %v1146_v63 = vsel %vm332_vm1, %v3083_v54, 0.0 }
 0x657   : > { %1147 = vadd.xlane.f32.xlu1 %v1146_v63  ;;  %2493 = vpow2.f32 %v1140_v62 }
 0x659   : > { %v3087_v2 = vpop.eup %2483 }
 0x65a   : > { %v3089_v3 = vpop.eup %2485  ;;  %v1155_v55 = vsel %vm332_vm1, %v3087_v2, 0.0 }
 0x65b   : > { %v3093_v59 = vpop.eup %2487  ;;  %1156 = vadd.xlane.f32.xlu0 %v1155_v55  ;;  %v1149_v8 = vsel %vm332_vm1, %v3089_v3, 0.0 }
 0x65c   : > { %v1164_v5 = vsel %vm332_vm1, %v3093_v59, 0.0 }
 0x65d   : > { %1165 = vadd.xlane.f32.xlu1 %v1164_v5 }
 0x65f   : > { %v3099_v0 = vpop.eup %2489  ;;  %v1509_v7 = vpop.xlane.xlu1 %1508  ;;  %1150 = vadd.xlane.f32.xlu0 %v1149_v8 }
 0x660   : > { %v1527_v9 = vsub.f32 %v3044_v20, %v1509_v7  ;;  %v1158_v10 = vsel %vm332_vm1, %v3099_v0, 0.0 }
 0x661   : > { %1159 = vadd.xlane.f32.xlu1 %v1158_v10 }
 0x662   : > { %v1537_v11 = vmul.f32 1.442695, %v1527_v9 }
 0x663   : > { %v3104_v12 = vpop.eup %2491  ;;  %v1503_v13 = vpop.xlane.xlu1 %1502 }
 0x664   : > { %2495 = vpow2.f32 %v1537_v11  ;;  %v1525_v14 = vsub.f32 %v3048_v22, %v1503_v13  ;;  %v1167_v15 = vsel %vm332_vm1, %v3104_v12, 0.0  ;;  %v3109_v16 = vpop.eup %2493 }
 0x665   : > { %1168 = vadd.xlane.f32.xlu0 %v1167_v15  ;;  %v1506_v17 = vpop.xlane.xlu0 %1505  ;;  %v1161_v24 = vsel %vm332_vm1, %v3109_v16, 0.0 }
 0x666   : > { %v1533_v18 = vmul.f32 1.442695, %v1525_v14  ;;  %v1526_v19 = vsub.f32 %v3054_v25, %v1506_v17 }
 0x667   : > { %v1521_v20 = vpop.xlane.xlu1 %1520 }
 0x668   : > { %2497 = vpow2.f32 %v1533_v18  ;;  %v1531_v21 = vsub.f32 %v3058_v27, %v1521_v20  ;;  %v1535_v4 = vmul.f32 1.442695, %v1526_v19 }
 0x669   : > { %1162 = vadd.xlane.f32.xlu0 %v1161_v24  ;;  %v1512_v26 = vpop.xlane.xlu0 %1511 }
 0x66a   : > { %v1545_v22 = vmul.f32 1.442695, %v1531_v21  ;;  %v1528_v28 = vsub.f32 %v3050_v23, %v1512_v26 }
 0x66b   : > { %v1515_v1 = vpop.xlane.xlu1 %1514 }
 0x66c   : > { %2499 = vpow2.f32 %v1545_v22  ;;  %v1539_v31 = vmul.f32 1.442695, %v1528_v28  ;;  %v1529_v32 = vsub.f32 %v3062_v29, %v1515_v1 }
 0x66d   : > { %v1518_v33 = vpop.xlane.xlu0 %1517 }
 0x66e   : > { %2501 = vpow2.f32 %v1539_v31  ;;  %v1541_v25 = vmul.f32 1.442695, %v1529_v32  ;;  %v1530_v27 = vsub.f32 %v3070_v30, %v1518_v33 }
 0x66f   : > { %2503 = vpow2.f32 %v1535_v4  ;;  %v3117_v34 = vpop.permute.xlu1 %1619 }
 0x670   : > { %2505 = vpow2.f32 %v1541_v25  ;;  %2330 = vmatprep.subr.bf16.mxu0 %v3117_v34  ;;  %v1543_v29 = vmul.f32 1.442695, %v1530_v27 }
 0x671   : > { %v3121_v35 = vpop.eup %2495  ;;  %v1524_v23 = vpop.xlane.xlu0 %1523 }
 0x672   : > { %v1532_v36 = vsub.f32 %v3066_v6, %v1524_v23  ;;  %v1555_v37 = vsel %vm332_vm1, %v3121_v35, 0.0 }
 0x673   : > { %1556 = vadd.xlane.f32.xlu1 %v1555_v37 }
 0x674   : > { %v1547_v38 = vmul.f32 1.442695, %v1532_v36 }
 0x675   : > { %v3126_v39 = vpop.eup %2497 }
 0x676   : > { %2507 = vpow2.f32 %v1547_v38  ;;  %v1549_v40 = vsel %vm332_vm1, %v3126_v39, 0.0 }
 0x677   : > { %1550 = vadd.xlane.f32.xlu1 %v1549_v40  ;;  %2509 = vpow2.f32 %v1543_v29 }
 0x679   : > { %v3130_v30 = vpop.eup %2499 }
 0x67a   : > { %v1567_v41 = vsel %vm332_vm1, %v3130_v30, 0.0 }
 0x67b   : > { %v3134_v6 = vpop.eup %2501  ;;  %1568 = vadd.xlane.f32.xlu1 %v1567_v41 }
 0x67c   : > { %v3136_v42 = vpop.eup %2503  ;;  %v1558_v43 = vsel %vm332_vm1, %v3134_v6, 0.0 }
 0x67d   : > { %v3140_v44 = vpop.eup %2505  ;;  %1559 = vadd.xlane.f32.xlu0 %v1558_v43  ;;  %v1552_v48 = vsel %vm332_vm1, %v3136_v42, 0.0 }
 0x67e   : > { %v1561_v45 = vsel %vm332_vm1, %v3140_v44, 0.0 }
 0x67f   : > { %1562 = vadd.xlane.f32.xlu1 %v1561_v45 }
 0x681   : > { %1553 = vadd.xlane.f32.xlu0 %v1552_v48 }
 0x683   : > { %v3146_v49 = vpop.eup %2507 }
 0x684   : > { %v1570_v50 = vsel %vm332_vm1, %v3146_v49, 0.0  ;;  %v3150_v56 = vpop.eup %2509 }
 0x685   : > { %1571 = vadd.xlane.f32.xlu0 %v1570_v50  ;;  %v1564_v57 = vsel %vm332_vm1, %v3150_v56, 0.0 }
 0x689   : > { %1565 = vadd.xlane.f32.xlu0 %v1564_v57 }
 0x690   : > { %1615 = vrot.lane.b32.xlu1 %v2466_v46, %s2626_s25 }
 0x694   : > { %1613 = vrot.lane.b32.xlu1 %v2467_v47, %s2626_s25 }
 0x69f   : > { %1617 = vrot.lane.b32.xlu0 %v2468_v58, %s2626_s25 }
 0x6dc   : > { %v1154_v61 = vpop.xlane.xlu1 %1153 }
 0x6e0   : > { %v1148_v51 = vpop.xlane.xlu1 %1147 }
 0x6e4   : > { %v1157_v52 = vpop.xlane.xlu0 %1156 }
 0x6e5   : > { %2511 = vrcp.f32 %v1157_v52 }
 0x6e6   : > { %2513 = vrcp.f32 %v1148_v51  ;;  %v1166_v62 = vpop.xlane.xlu1 %1165 }
 0x6e7   : > { %2515 = vrcp.f32 %v1154_v61 }
 0x6e8   : > { %v1151_v53 = vpop.xlane.xlu0 %1150 }
 0x6e9   : > { %2517 = vrcp.f32 %v1151_v53 }
 0x6ea   : > { %v1160_v63 = vpop.xlane.xlu1 %1159 }
 0x6ee   : > { %v1169_v55 = vpop.xlane.xlu0 %1168 }
 0x6ef   : > { %2519 = vrcp.f32 %v1169_v55 }
 0x6f0   : > { %2521 = vrcp.f32 %v1160_v63 }
 0x6f1   : > { %2523 = vrcp.f32 %v1166_v62 }
 0x6f2   : > { %v1163_v5 = vpop.xlane.xlu0 %1162  ;;  %v2512_v8 = vpop.eup %2511 }
 0x6f3   : > { %2525 = vrcp.f32 %v1163_v5  ;;  %v2514_v7 = vpop.eup %2513  ;;  %v1177_v11 = vmul.f32 %v2512_v8, %v3087_v2 }
 0x6f4   : > { %v2516_v9 = vpop.eup %2515  ;;  %v1171_v13 = vmul.f32 %v2514_v7, %v3083_v54 }
 0x6f5   : > { %v1175_v15 = vmul.f32 %v2516_v9, %v3078_v60 }
 0x6f6   : > { %v2518_v10 = vpop.eup %2517 }
 0x6f7   : > { %v1173_v14 = vmul.f32 %v2518_v10, %v3089_v3  ;;  %v1187_v18 = vpack.c.bf16 %v1177_v11, %v1175_v15  ;;  %v2469_v10 = vld [vmem:[%s3316_s6 + $0x18] sm:$0xff]   ;;  %v2470_v11 = vld [vmem:[%s3316_s6 + $0x10] sm:$0xff]  }
 0x6f9   : > { %v1186_v17 = vpack.c.bf16 %v1173_v14, %v1171_v13  ;;  %v2471_v14 = vld [vmem:[%s3316_s6 + $0x8] sm:$0xff]  }
 0x6fb   : > { %2306 = vmatprep.mubr.msk.bf16.mxu0 %vm332_vm1, %v1186_v17 }
 0x6fc   : > { %v1557_v19 = vpop.xlane.xlu1 %1556  ;;  %2307 = vmatmul.mubr.msk.bf16.vlgmr.msra.gmra.mxu0 %vm332_vm1, %v1187_v18  ;;  %v2520_v20 = vpop.eup %2519 }
 0x6fd   : > { %2331 = vmatpush3.bf16.msra.mxu0 %v3117_v34  ;;  %v2522_v21 = vpop.eup %2521  ;;  %v1185_v2 = vmul.f32 %v2520_v20, %v3104_v12 }
 0x6fe   : > { %v2524_v24 = vpop.eup %2523  ;;  %v1179_v54 = vmul.f32 %v2522_v21, %v3099_v0 }
 0x6ff   : > { %v1183_v22 = vmul.f32 %v2524_v24, %v3093_v59 }
 0x700   : > { %v2526_v26 = vpop.eup %2525  ;;  %v1551_v60 = vpop.xlane.xlu1 %1550 }
 0x701   : > { %v1181_v3 = vmul.f32 %v2526_v26, %v3109_v16  ;;  %v1189_v4 = vpack.c.bf16 %v1185_v2, %v1183_v22  ;;  %2527 = vrcp.f32 %v1551_v60 }
 0x703   : > { %v1188_v28 = vpack.c.bf16 %v1181_v3, %v1179_v54 }
 0x704   : > { %v1569_v31 = vpop.xlane.xlu1 %1568 }
 0x705   : > { %2310 = vmatprep.mubr.msk.bf16.mxu0 %vm332_vm1, %v1188_v28 }
 0x706   : > { %2311 = vmatmul.mubr.msk.bf16.gmra.mxu0 %vm332_vm1, %v1189_v4  ;;  %v1560_v1 = vpop.xlane.xlu0 %1559 }
 0x708   : > { %v1563_v12 = vpop.xlane.xlu1 %1562 }
 0x70a   : > { %v1554_v32 = vpop.xlane.xlu0 %1553 }
 0x70b   : > { %2529 = vrcp.f32 %v1554_v32 }
 0x70c   : > { %2531 = vrcp.f32 %v1560_v1  ;;  %v1616_v16 = vpop.permute.xlu1 %1615 }
 0x70d   : > { %2533 = vrcp.f32 %v1557_v19  ;;  %v2472_v19 = vld [vmem:[%s3316_s6] sm:$0xff]  }
 0x70e   : > { %v1572_v33 = vpop.xlane.xlu0 %1571  ;;  %2535 = vrcp.f32 %v1563_v12  ;;  %v2528_v59 = vpop.eup %2527 }
 0x70f   : > { %v1574_v27 = vmul.f32 %v2528_v59, %v3126_v39 }
 0x710   : > { %v1614_v38 = vpop.permute.xlu1 %1613 }
 0x712   : > { %v1566_v0 = vpop.xlane.xlu0 %1565 }
 0x713   : > { %2537 = vrcp.f32 %v1566_v0 }
 0x714   : > { %2539 = vrcp.f32 %v1572_v33 }
 0x715   : > { %2541 = vrcp.f32 %v1569_v31 }
 0x716   : > { %v1618_v25 = vpop.permute.xlu0 %1617 }
 0x717   : > { %2332 = vmatprep.subr.bf16.mxu0 %v1618_v25 }
 0x718   : > { %v2530_v34 = vpop.eup %2529  ;;  %2333 = vmatpush3.bf16.msra.mxu0 %v1618_v25 }
 0x719   : > { %2334 = vmatprep.subr.bf16.mxu0 %v1616_v16  ;;  %v1576_v23 = vmul.f32 %v2530_v34, %v3136_v42  ;;  %v2532_v36 = vpop.eup %2531 }
 0x71a   : > { %v2534_v29 = vpop.eup %2533  ;;  %v1580_v40 = vmul.f32 %v2532_v36, %v3134_v6 }
 0x71b   : > { %v1589_v37 = vpack.c.bf16 %v1576_v23, %v1574_v27  ;;  %v2536_v41 = vpop.eup %2535  ;;  %v1578_v43 = vmul.f32 %v2534_v29, %v3121_v35 }
 0x71c   : > { %2335 = vmatpush3.bf16.msra.mxu0 %v1616_v16  ;;  %v1582_v39 = vmul.f32 %v2536_v41, %v3140_v44 }
 0x71d   : > { %2336 = vmatprep.subr.bf16.mxu0 %v1614_v38  ;;  %2338 = vmatprep.mubr.msk.bf16.mxu0 %vm332_vm1, %v1589_v37  ;;  %v1590_v48 = vpack.c.bf16 %v1580_v40, %v1578_v43  ;;  %v2110_v37 = vld [vmem:[%s3317_s7] ss:$0 sm:$0xff] }
 0x71e   : > { %v1904_v43 = vld [vmem:[%s2775_s23] sm:$0xff] }
 0x720   : > { %v2538_v45 = vpop.eup %2537  ;;  %2337 = vmatpush3.bf16.msra.mxu0 %v1614_v38  ;;  %v1906_v38 = vld [vmem:[%s2775_s23 + $0x10] sm:$0xff] }
 0x721   : > { %v1584_v42 = vmul.f32 %v2538_v45, %v3150_v56  ;;  %v2540_v50 = vpop.eup %2539  ;;  %2346 = vmatprep.subr.bf16.mxu0 %v2469_v10 }
 0x722   : > { %v2542_v46 = vpop.eup %2541  ;;  %v1588_v6 = vmul.f32 %v2540_v50, %v3146_v49 }
 0x723   : > { %2339 = vmatmul.mubr.msk.bf16.vlgmr.msra.gmra.mxu0 %vm332_vm1, %v1590_v48  ;;  %v1591_v57 = vpack.c.bf16 %v1584_v42, %v1582_v39  ;;  %v1586_v47 = vmul.f32 %v2542_v46, %v3130_v30  ;;  %v1907_v42 = vld [vmem:[%s2775_s23 + $0x18] sm:$0xff] }
 0x724   : > { %2347 = vmatpush3.bf16.msra.mxu0 %v2469_v10 }
 0x725   : > { %2342 = vmatprep.mubr.msk.bf16.mxu0 %vm332_vm1, %v1591_v57  ;;  %v1592_v58 = vpack.c.bf16 %v1588_v6, %v1586_v47  ;;  %2348 = vmatprep.subr.bf16.mxu0 %v2470_v11  ;;  %v1905_v6 = vld [vmem:[%s2775_s23 + $0x8] sm:$0xff] }
 0x728   : > { %2349 = vmatpush3.bf16.msra.mxu0 %v2470_v11 }
 0x729   : > { %2350 = vmatprep.subr.bf16.mxu0 %v2471_v14 }
 0x72b   : > { %2343 = vmatmul.mubr.msk.bf16.gmra.mxu0 %vm332_vm1, %v1592_v58 }
 0x72c   : > { %2351 = vmatpush3.bf16.msra.mxu0 %v2471_v14 }
 0x72d   : > { %2352 = vmatprep.subr.bf16.mxu0 %v2472_v19 }
 0x730   : > { %2353 = vmatpush3.bf16.msra.mxu0 %v2472_v19 }
 0x7bc   : > { %v2308_v35 = vpop.f32.mrf.mxu0 }
 0x7bd   : > { %v2139_v61 = vpack.c.bf16 %v2308_v35, %v2308_v35 }
 0x7be   : > { %v1260_v44 = vpop.f32.mrf.mxu0 }
 0x7bf   : > { %1326 = vst.msk [vmem:[#allocation3 + $0x8] sm:$0xf] %vm1323_vm6, %v2139_v61  ;;  %v2137_v56 = vpack.c.bf16 %v1260_v44, %v1260_v44  ;;  %v1910_v61 = vld [vmem:[%s2775_s23 + $0x30] sm:$0xff] }
 0x7c0   : > { %v2309_v51 = vpop.f32.mrf.mxu0 }
 0x7c1   : > { %1324 = vst.msk [vmem:[#allocation3] sm:$0xf] %vm1323_vm6, %v2137_v56  ;;  %v2140_v52 = vpack.c.bf16 %v2309_v51, %v2309_v51 }
 0x7c2   : > { %v1263_v62 = vpop.f32.mrf.mxu0 }
 0x7c3   : > { %1327 = vst.msk [vmem:[#allocation3 + $0xc] sm:$0xf] %vm1323_vm6, %v2140_v52  ;;  %v2138_v49 = vpack.c.bf16 %v1263_v62, %v1263_v62  ;;  %v1908_v52 = vld [vmem:[%s2775_s23 + $0x20] sm:$0xff] }
 0x7c5   : > { %1325 = vst.msk [vmem:[#allocation3 + $0x4] sm:$0xf] %vm1323_vm6, %v2138_v49 }
 0x7c6   : > { %v2312_v30 = vpop.f32.mrf.mxu0 }
 0x7c7   : > { %v2143_v53 = vpack.c.bf16 %v2312_v30, %v2312_v30 }
 0x7c8   : > { %v1276_v63 = vpop.f32.mrf.mxu0 }
 0x7c9   : > { %1330 = vst.msk [vmem:[#allocation3 + $0x18] sm:$0xf] %vm1323_vm6, %v2143_v53  ;;  %v2141_v55 = vpack.c.bf16 %v1276_v63, %v1276_v63  ;;  %v1911_v53 = vld [vmem:[%s2775_s23 + $0x38] sm:$0xff] }
 0x7ca   : > { %v2313_v5 = vpop.f32.mrf.mxu0 }
 0x7cb   : > { %1328 = vst.msk [vmem:[#allocation3 + $0x10] sm:$0xf] %vm1323_vm6, %v2141_v55  ;;  %v2144_v8 = vpack.c.bf16 %v2313_v5, %v2313_v5 }
 0x7cc   : > { %v1279_v7 = vpop.f32.mrf.mxu0 }
 0x7cd   : > { %1331 = vst.msk [vmem:[#allocation3 + $0x1c] sm:$0xf] %vm1323_vm6, %v2144_v8  ;;  %v2142_v9 = vpack.c.bf16 %v1279_v7, %v1279_v7  ;;  %v1909_v8 = vld [vmem:[%s2775_s23 + $0x28] sm:$0xff]  ;;  %s2543_s23 = scalar_lea.vmem %s3257_s14, 1024 }
 0x7ce   : > { %p2544_p12 = scmp.ne.s32.totalorder %s3257_s14, %s2543_s23 }
 0x7cf   : > { %1329 = vst.msk [vmem:[#allocation3 + $0x14] sm:$0xf] %vm1323_vm6, %v2142_v9 }
 0x7d0   : > { %p2545_p13 = pnand %p2544_p12, %p2715_p4 }
 0x7d2   : > { %p2546_p0 = pneg %p2545_p13 }
 0x7e3   : > { %v2340_v13 = vpop.f32.mrf.mxu0 }
 0x7e4   : > { %v2147_v21 = vpack.c.bf16 %v2340_v13, %v2340_v13 }
 0x7e5   : > { %v1671_v15 = vpop.f32.mrf.mxu0 }
 0x7e6   : > { %v2145_v17 = vpack.c.bf16 %v1671_v15, %v1671_v15 }
 0x7e7   : > { %v2341_v18 = vpop.f32.mrf.mxu0 }
 0x7e8   : > { %1726 = vrot.lane.b32.xlu0 %v2145_v17, %s2625_s24  ;;  %v2148_v54 = vpack.c.bf16 %v2341_v18, %v2341_v18 }
 0x7e9   : > { %v1674_v20 = vpop.f32.mrf.mxu0 }
 0x7ea   : > { %v2146_v24 = vpack.c.bf16 %v1674_v20, %v1674_v20 }
 0x7eb   : > { %v2344_v26 = vpop.f32.mrf.mxu0 }
 0x7ec   : > { %1730 = vrot.lane.b32.xlu0 %v2147_v21, %s2625_s24  ;;  %1728 = vrot.lane.b32.xlu1 %v2146_v24, %s2625_s24  ;;  %v2151_v28 = vpack.c.bf16 %v2344_v26, %v2344_v26 }
 0x7ed   : > { %v1687_v2 = vpop.f32.mrf.mxu0 }
 0x7ee   : > { %v2149_v3 = vpack.c.bf16 %v1687_v2, %v1687_v2 }
 0x7ef   : > { %v2345_v60 = vpop.f32.mrf.mxu0 }
 0x7f0   : > { %1732 = vrot.lane.b32.xlu1 %v2148_v54, %s2625_s24  ;;  %1734 = vrot.lane.b32.xlu0 %v2149_v3, %s2625_s24  ;;  %v2152_v1 = vpack.c.bf16 %v2345_v60, %v2345_v60 }
 0x7f1   : > { %v1690_v22 = vpop.f32.mrf.mxu0 }
 0x7f2   : > { %v2150_v4 = vpack.c.bf16 %v1690_v22, %v1690_v22 }
 0x7f4   : > { %1738 = vrot.lane.b32.xlu0 %v2151_v28, %s2625_s24  ;;  %1736 = vrot.lane.b32.xlu1 %v2150_v4, %s2625_s24 }
 0x7f8   : > { %1740 = vrot.lane.b32.xlu1 %v2152_v1, %s2625_s24  ;;  %s2547_s24 = sshll.u32 %s2627_s21, 4  ;;  %s2548_s24 = int_to_ptr.vmem [resolvable:$false] %s2547_s24 }
 0x7f9   : > { %s2549_s25 = scalar_lea.vmem %s2548_s24, 2048  ;;  %p2550_p1 = scmp.lt.s32.totalorder %s3257_s14, %s2548_s24 }
 0x7fa   : > { %p2551_p2 = scmp.lt.s32.totalorder %s2549_s25, %s2543_s23 }
 0x7fc   : > { %p2552_p3 = por %p2551_p2, %p2550_p1 }
 0x7fe   : > { %p2553_p5 = pnand %p2552_p3, %p2546_p0 }
 0x85a   : > { %v1727_v31 = vpop.permute.xlu0 %1726 }
 0x85b   : > { %1751 = vst.msk [vmem:[#allocation3] sm:$0xf] %vm1750_vm7, %v1727_v31 }
 0x85e   : > { %v1731_v32 = vpop.permute.xlu0 %1730  ;;  %v1729_v12 = vpop.permute.xlu1 %1728 }
 0x85f   : > { %1753 = vst.msk [vmem:[#allocation3 + $0x8] sm:$0xf] %vm1750_vm7, %v1731_v32  ;;  %1752 = vst.msk [vmem:[#allocation3 + $0x4] sm:$0xf] %vm1750_vm7, %v1729_v12 }
 0x862   : > { %v1733_v33 = vpop.permute.xlu1 %1732  ;;  %v1735_v0 = vpop.permute.xlu0 %1734 }
 0x863   : > { %1754 = vst.msk [vmem:[#allocation3 + $0xc] sm:$0xf] %vm1750_vm7, %v1733_v33  ;;  %1755 = vst.msk [vmem:[#allocation3 + $0x10] sm:$0xf] %vm1750_vm7, %v1735_v0 }
 0x866   : > { %v1739_v59 = vpop.permute.xlu0 %1738  ;;  %v1737_v16 = vpop.permute.xlu1 %1736  ;;  %v2473_v25 = vld [vmem:[#allocation3] sm:$0xff]  }
 0x867   : > { %1757 = vst.msk [vmem:[#allocation3 + $0x18] sm:$0xf] %vm1750_vm7, %v1739_v59  ;;  %1756 = vst.msk [vmem:[#allocation3 + $0x14] sm:$0xf] %vm1750_vm7, %v1737_v16  ;;  %2354 = vmatprep.mubr.msk.bf16.mxu0 %vm332_vm1, %v2473_v25 }
 0x86a   : > { %v1741_v34 = vpop.permute.xlu1 %1740  ;;  %v2474_v27 = vld [vmem:[#allocation3 + $0x8] sm:$0xff]  }
 0x86b   : > { %1758 = vst.msk [vmem:[#allocation3 + $0x1c] sm:$0xf] %vm1750_vm7, %v1741_v34  ;;  %2355 = vmatmul.mubr.msk.bf16.vlgmr.msra.gmra.mxu0 %vm332_vm1, %v2474_v27 }
 0x86e   : > { %v2475_v23 = vld [vmem:[#allocation3 + $0x10] sm:$0xff]  }
 0x86f   : > { %2358 = vmatprep.mubr.msk.bf16.mxu0 %vm332_vm1, %v2475_v23 }
 0x872   : > { %v2476_v36 = vld [vmem:[#allocation3 + $0x18] sm:$0xff]  }
 0x873   : > { %2359 = vmatmul.mubr.msk.bf16.gmra.mxu0 %vm332_vm1, %v2476_v36 }
 0x92b   : > { %v2356_v29 = vpop.f32.mrf.mxu0 }
 0x92c   : > { %v1881_v40 = vadd.f32 %v2356_v29, %v2110_v37 }
 0x92d   : > { %v1872_v41 = vpop.f32.mrf.mxu0 }
 0x92e   : > { %v1914_v45 = vadd.f32 %v1906_v38, %v1881_v40  ;;  %v1873_v48 = vadd.f32 %v2110_v37, %v1872_v41 }
 0x92f   : > { %v2357_v39 = vpop.f32.mrf.mxu0 }
 0x930   : > { %1922 = vst.msk [vmem:[%s3231_s11 + $0x10] sm:$0xff] %vm332_vm1, %v1914_v45  ;;  %v1912_v50 = vadd.f32 %v1904_v43, %v1873_v48  ;;  %v1884_v57 = vadd.f32 %v2357_v39, %v2110_v37 }
 0x931   : > { %v1875_v46 = vpop.f32.mrf.mxu0 }
 0x932   : > { %1920 = vst.msk [vmem:[%s3231_s11] sm:$0xff] %vm332_vm1, %v1912_v50  ;;  %v1915_v47 = vadd.f32 %v1907_v42, %v1884_v57  ;;  %v1876_v58 = vadd.f32 %v2110_v37, %v1875_v46 }
 0x933   : > { %v2360_v35 = vpop.f32.mrf.mxu0 }
 0x934   : > { %1923 = vst.msk [vmem:[%s3231_s11 + $0x18] sm:$0xff] %vm332_vm1, %v1915_v47  ;;  %v1913_v44 = vadd.f32 %v1905_v6, %v1876_v58  ;;  %v1897_v56 = vadd.f32 %v2360_v35, %v2110_v37 }
 0x935   : > { %v1888_v51 = vpop.f32.mrf.mxu0 }
 0x936   : > { %1921 = vst.msk [vmem:[%s3231_s11 + $0x8] sm:$0xff] %vm332_vm1, %v1913_v44  ;;  %v1918_v62 = vadd.f32 %v1910_v61, %v1897_v56  ;;  %v1889_v49 = vadd.f32 %v2110_v37, %v1888_v51 }
 0x937   : > { %v2361_v30 = vpop.f32.mrf.mxu0 }
 0x938   : > { %1926 = vst.msk [vmem:[%s3231_s11 + $0x30] sm:$0xff] %vm332_vm1, %v1918_v62  ;;  %v1916_v63 = vadd.f32 %v1908_v52, %v1889_v49  ;;  %v1900_v55 = vadd.f32 %v2361_v30, %v2110_v37 }
 0x939   : > { %v1891_v5 = vpop.f32.mrf.mxu0 }
 0x93a   : > { %1924 = vst.msk [vmem:[%s3231_s11 + $0x20] sm:$0xff] %vm332_vm1, %v1916_v63  ;;  %v1919_v7 = vadd.f32 %v1911_v53, %v1900_v55  ;;  %v1892_v9 = vadd.f32 %v2110_v37, %v1891_v5 }
 0x93c   : > { %1927 = vst.msk [vmem:[%s3231_s11 + $0x38] sm:$0xff] %vm332_vm1, %v1919_v7  ;;  %v1917_v10 = vadd.f32 %v1909_v8, %v1892_v9 }
 0x93e   : > { %1925 = vst.msk [vmem:[%s3231_s11 + $0x28] sm:$0xff] %vm332_vm1, %v1917_v10 }
 0x93f   : > { %2556 = shalt.err (!%p2553_p5)
}
 0x940   : > { %s2557_s22 = scalar_lea.hbm %s3255_s20, 1024  ;;  %s2561_s12 = scalar_lea.hbm %s3318_s8, 2048 }
 0x941   : > { %p2558_p6 = scmp.ne.s32.totalorder %s3255_s20, %s2557_s22  ;;  %p2562_p10 = scmp.lt.s32.totalorder %s3255_s20, %s3318_s8 }
 0x942   : > { %p2563_p11 = scmp.lt.s32.totalorder %s2561_s12, %s2557_s22 }
 0x943   : > { %p2559_p7 = pnand %p2558_p6, %p2715_p4 }
 0x944   : > { %p2564_p12 = por %p2563_p11, %p2562_p10 }
 0x945   : > { %p2560_p9 = pneg %p2559_p7 }
 0x947   : > { %p2565_p13 = pnand %p2564_p12, %p2560_p9 }
 0x949   : > { %2568 = shalt.err (!%p2565_p13)
}
 0x94a   : > { %s2628_s23 = smov 128   ;;  %s2629_s21 = smov 8  }
 0x94b   : > { %2370 = dma.vmem_to_hbm [thread:$0]  (%p2715_p4), %s3257_s14, 1024, %s3255_s20, %s3265_s30, %s2628_s23, %s2628_s23, %s2629_s21  }
 0x94c PF: > { %p2376_p0 = scmp.ge.s32.totalorder %s2619_s10, 2  ;;  %s1959_s24 = sand.u32 1, %s2599_s27  }
 0x94d   : > { %s1960_s25 = scalar_lea.sflag [#allocation5], %s1959_s24 }
 0x94e   : > { %p2373_p1 = pnand %p2376_p0, %p2722_p8 }
 0x950   : > { %p2374_p2 = pneg %p2373_p1 }
 0x952   : > { %2594 = dma.done.wait (%p2374_p2), %s1960_s25, 1024  }
 0x953   : > { %2596 = vsyncadd (%p2374_p2), %s1960_s25, 4294966272  ;;  %s21_s10 = sadd.s32 1, %s2619_s10   ;;  %s3323_s27 = smov %s2603_s28 }
 0x954   : > { %p18_p3 = scmp.ge.s32.totalorder %s21_s10, 4   ;;  %s3324_s28 = smov %s2607_s29 }
 0x955   : > { %s3325_s29 = smov %s2728_s18  ;;  %s3326_s30 = smov %s2615_s9 }
 0x956   : > { %s3327_s9 = smov %s3329_s13  ;;  %20 = sbr.rel (!%p18_p3) target bundleno = 4 (0x4), region = 93 }
 0x95b   :  { %1965 = vsyncpa [#allocation5], 1 }
 0x95c   :  { %1967 = vsyncpa [#allocation5 + $0x1], 1 }

</bundles_post_ra>
